<compile_context>
chip_gen: v7x
topology: tpu7x:2x2x1
jax: 0.10.0
libtpu: 0.0.40
codegen_flags: <defaults>
</compile_context>

<pallas_src>
import functools
import numpy as np
import jax
import jax.numpy as jnp
from jax import lax
from jax.experimental import pallas as pl
from jax.experimental.pallas import tpu as pltpu


# ----------------------------------------------------------------------------
# small helpers
# ----------------------------------------------------------------------------

def _cp(c):
    """Pad a channel count up to a multiple of 128 (lane-dense)."""
    return ((c + 127) // 128) * 128


def _largest_divisor(n, cap):
    t = max(1, min(n, cap))
    while n % t:
        t -= 1
    return t


def _tpu_vmem_capacity():
    try:
        info = pltpu.get_tpu_info()
        for name in ("vmem_capacity_bytes", "vmem_bytes", "vmem_size_bytes"):
            v = getattr(info, name, None)
            if v:
                return int(v)
    except Exception:
        pass
    return 64 * 1024 * 1024  # conservative default (v7x-sized VMEM)


_VMEM_PHYS = _tpu_vmem_capacity()
_VMEM_LIMIT = min((_VMEM_PHYS * 3) // 4, 112 * 1024 * 1024)   # ~48 MiB on v7x, ~96 MiB on v5e/v6e
_TILE_BUDGET = (3 * 1024 * 1024 if _VMEM_LIMIT >= 80 * 1024 * 1024 else 2 * 1024 * 1024)


# ----------------------------------------------------------------------------
# Pallas kernels: small dense, layer-norm(+residual), box attention (context path)
# ----------------------------------------------------------------------------

def _dense_kernel(x_ref, w_ref, b_ref, o_ref, *, act):
    y = jnp.dot(x_ref[...], w_ref[...], preferred_element_type=jnp.float32) + b_ref[...]
    if act == "relu":
        y = jnp.maximum(y, 0.0)
    elif act == "tanh":
        y = jnp.tanh(y)
    o_ref[...] = y.astype(o_ref.dtype)


def dense(x, w, b, act=None):
    """Small (M,K)@(K,C)+b matmul; only used for the tiny attention/fc layers."""
    M, K = x.shape
    C = w.shape[1]
    return pl.pallas_call(
        functools.partial(_dense_kernel, act=act),
        out_shape=jax.ShapeDtypeStruct((M, C), jnp.float32),
        grid=(1,),
        in_specs=[pl.BlockSpec((M, K), lambda i: (0, 0)),
                  pl.BlockSpec((K, C), lambda i: (0, 0)),
                  pl.BlockSpec((1, C), lambda i: (0, 0))],
        out_specs=pl.BlockSpec((M, C), lambda i: (0, 0)),
    )(x, w, b.reshape(1, C))


def _ln_res_kernel(x_ref, r_ref, g_ref, b_ref, o_ref, *, eps):
    x = x_ref[...] + r_ref[...]                      # fused residual add
    mean = jnp.mean(x, axis=-1, keepdims=True)
    var = jnp.mean(jnp.square(x - mean), axis=-1, keepdims=True)
    o_ref[...] = ((x - mean) * lax.rsqrt(var + eps) * g_ref[...]
                  + b_ref[...]).astype(o_ref.dtype)


def layer_norm_residual(x, res, gamma, beta, eps=1e-5):
    M, D = x.shape
    return pl.pallas_call(
        functools.partial(_ln_res_kernel, eps=eps),
        out_shape=jax.ShapeDtypeStruct((M, D), jnp.float32),
        grid=(1,),
        in_specs=[pl.BlockSpec((M, D), lambda i: (0, 0)),
                  pl.BlockSpec((M, D), lambda i: (0, 0)),
                  pl.BlockSpec((1, D), lambda i: (0, 0)),
                  pl.BlockSpec((1, D), lambda i: (0, 0))],
        out_specs=pl.BlockSpec((M, D), lambda i: (0, 0)),
    )(x, res, gamma.reshape(1, D), beta.reshape(1, D))


def _box_attention_kernel(q_ref, k_ref, v_ref, wg_ref, mask_ref, o_ref, *, dim_k):
    q = q_ref[0]          # (O, D)
    k = k_ref[0]
    v = v_ref[0]
    wg = wg_ref[0]        # (O, O) relu'd geometry weights
    m = mask_ref[0]       # (1, O)  labels as float; 0 => masked column (mirrors the source)
    scores = lax.dot_general(q, k, (((1,), (1,)), ((), ())),
                             preferred_element_type=jnp.float32)
    scores = scores * (1.0 / np.sqrt(dim_k))
    scores = jnp.where(m == 0.0, -1e9, scores)
    logits = jnp.log(jnp.maximum(wg, 1e-6)) + scores
    logits = logits - jnp.max(logits, axis=-1, keepdims=True)
    p = jnp.exp(logits)
    p = p / jnp.sum(p, axis=-1, keepdims=True)
    o_ref[0] = jnp.dot(p, v, preferred_element_type=jnp.float32).astype(o_ref.dtype)


def box_attention(q, k, v, wg, mask_labels):
    B, O, D = q.shape
    return pl.pallas_call(
        functools.partial(_box_attention_kernel, dim_k=D),
        out_shape=jax.ShapeDtypeStruct((B, O, D), jnp.float32),
        grid=(B,),
        in_specs=[
            pl.BlockSpec((1, O, D), lambda b: (b, 0, 0)),
            pl.BlockSpec((1, O, D), lambda b: (b, 0, 0)),
            pl.BlockSpec((1, O, D), lambda b: (b, 0, 0)),
            pl.BlockSpec((1, O, O), lambda b: (b, 0, 0)),
            pl.BlockSpec((1, 1, O), lambda b: (b, 0, 0)),
        ],
        out_specs=pl.BlockSpec((1, O, D), lambda b: (b, 0, 0)),
        compiler_params=pltpu.CompilerParams(dimension_semantics=("parallel",)),
    )(q, k, v, wg, mask_labels.reshape(B, 1, O))


# ----------------------------------------------------------------------------
# Pallas kernel: tiled channel statistics (only for the fc output, every other BN's
# statistics are produced by the preceding conv's fused epilogue)
# ----------------------------------------------------------------------------

def _stats_kernel(x_ref, s_ref, q_ref):
    @pl.when(pl.program_id(0) == 0)
    def _():
        s_ref[...] = jnp.zeros_like(s_ref)
        q_ref[...] = jnp.zeros_like(q_ref)
    x = x_ref[...].astype(jnp.float32)
    s_ref[...] += jnp.sum(x, axis=0, keepdims=True)
    q_ref[...] += jnp.sum(x * x, axis=0, keepdims=True)


def channel_stats(x):
    """Per-channel (sum, sumsq, count) over (N,H,W) with a tiled accumulator kernel."""
    N, H, W, C = x.shape
    R = N * H * W
    x2 = x.reshape(R, C)
    tr = _largest_divisor(R, 2048)
    s, q = pl.pallas_call(
        _stats_kernel,
        out_shape=(jax.ShapeDtypeStruct((1, C), jnp.float32),
                   jax.ShapeDtypeStruct((1, C), jnp.float32)),
        grid=(R // tr,),
        in_specs=[pl.BlockSpec((tr, C), lambda i: (i, 0))],
        out_specs=(pl.BlockSpec((1, C), lambda i: (0, 0)),
                   pl.BlockSpec((1, C), lambda i: (0, 0))),
        compiler_params=pltpu.CompilerParams(dimension_semantics=("arbitrary",)),
    )(x2)
    return s, q, R


def bn_affine(stats, gamma, beta, eps=1e-5):
    """Train-mode batch-norm folded into a per-channel scale/shift (applied inside the consumer)."""
    s, q, count = stats
    mean = s / count
    var = jnp.maximum(q / count - mean * mean, 0.0)
    inv = lax.rsqrt(var + eps)
    scale = gamma.reshape(1, -1) * inv
    shift = beta.reshape(1, -1) - mean * scale
    return scale, shift


# ----------------------------------------------------------------------------
# Pallas kernel: fused 3x3 conv
#   (BN affine + ReLU on the input, conv zero-padding mask, optional fused 2x nearest upsample,
#    optional shortcut add, optional tanh, per-channel sum/sumsq epilogue for the NEXT batch-norm)
# ----------------------------------------------------------------------------

def _make_conv3x3_kernel(*, th, W, H, cin_p, cout_p, relu_in, act, upsample,
                         has_add, emit_stats):
    def body(x_ref, w_ref, b_ref, sc_ref, sh_ref, add_ref, o_ref, s_ref, q_ref):
        i = pl.program_id(1)
        row0 = pl.multiple_of(i * th, th)
        sc = sc_ref[...]                      # (1, cin_p) f32  BN scale
        sh = sh_ref[...]                      # (1, cin_p) f32  BN shift
        bias = b_ref[...]                     # (1, cout_p) f32

        if emit_stats:
            @pl.when(jnp.logical_and(pl.program_id(0) == 0, i == 0))
            def _():
                s_ref[...] = jnp.zeros_like(s_ref)
                q_ref[...] = jnp.zeros_like(q_ref)

        # Column-stacked input window: colcat[t*W + c, j*cin_p + ch] holds the BN+ReLU'd pixel at
        # padded row (row0 + t), padded col (c + j).  The border mask reproduces the conv's zero
        # padding (applied AFTER BN/ReLU, as in the reference).
        rows = row0 + lax.broadcasted_iota(jnp.int32, (th + 2, W, cin_p), 0)
        row_ok = jnp.logical_and(rows >= 1, rows <= H)
        parts = []
        for j in range(3):
            raw = x_ref[0, pl.ds(row0, th + 2), pl.ds(j, W), :].astype(jnp.float32)
            v = raw * sc + sh                                      # fused BN affine (f32)
            if relu_in:
                v = jnp.maximum(v, 0.0)
            cols = j + lax.broadcasted_iota(jnp.int32, (th + 2, W, cin_p), 1)
            ok = jnp.logical_and(row_ok, jnp.logical_and(cols >= 1, cols <= W))
            v = jnp.where(ok, v, 0.0)                              # conv zero-padding
            parts.append(v.astype(jnp.bfloat16))                   # bf16 MXU inputs
        colcat = jnp.concatenate(parts, axis=-1).reshape((th + 2) * W, 3 * cin_p)

        def accum_stats(y):
            if emit_stats:
                s_ref[...] += jnp.sum(y, axis=0, keepdims=True)
                q_ref[...] += jnp.sum(y * y, axis=0, keepdims=True)

        if not upsample:
            # 3 K-stacked matmuls (K = 3*cin_p), one per row-tap.
            acc = jnp.zeros((th * W, cout_p), jnp.float32)
            for dr in range(3):
                patch = colcat[dr * W:(dr + th) * W, :]
                acc = acc + jnp.dot(patch, w_ref[dr],
                                    preferred_element_type=jnp.float32)
            y = acc + bias
            if has_add:
                y = y + add_ref[0].astype(jnp.float32).reshape(th * W, cout_p)
            if act == "tanh":
                y = jnp.tanh(y)
            accum_stats(y)
            o_ref[0] = y.reshape(th, W, cout_p).astype(o_ref.dtype)
        else:
            # Nearest-2x upsample fused via output-parity decomposition; tap weights are already
            # merged per (parity, group) outside the kernel.  8 matmuls with K = 2*cin_p.
            for da in range(2):
                for db in range(2):
                    acc = jnp.zeros((th * W, cout_p), jnp.float32)
                    for gr in range(2):
                        dr = da + gr
                        patch = colcat[dr * W:(dr + th) * W,
                                       db * cin_p:(db + 2) * cin_p]
                        acc = acc + jnp.dot(patch, w_ref[(da * 2 + db) * 2 + gr],
                                            preferred_element_type=jnp.float32)
                    y = acc + bias
                    accum_stats(y)
                    o_ref[0, :, da, :, db * cout_p:(db + 1) * cout_p] = (
                        y.reshape(th, W, cout_p).astype(o_ref.dtype))

    if has_add and emit_stats:
        def kernel(x_ref, w_ref, b_ref, sc_ref, sh_ref, add_ref, o_ref, s_ref, q_ref):
            body(x_ref, w_ref, b_ref, sc_ref, sh_ref, add_ref, o_ref, s_ref, q_ref)
    elif has_add:
        def kernel(x_ref, w_ref, b_ref, sc_ref, sh_ref, add_ref, o_ref):
            body(x_ref, w_ref, b_ref, sc_ref, sh_ref, add_ref, o_ref, None, None)
    elif emit_stats:
        def kernel(x_ref, w_ref, b_ref, sc_ref, sh_ref, o_ref, s_ref, q_ref):
            body(x_ref, w_ref, b_ref, sc_ref, sh_ref, None, o_ref, s_ref, q_ref)
    else:
        def kernel(x_ref, w_ref, b_ref, sc_ref, sh_ref, o_ref):
            body(x_ref, w_ref, b_ref, sc_ref, sh_ref, None, o_ref, None, None)
    return kernel


def conv3x3(x, wk, b, scale, shift, *, relu_in, upsample=False, act=None, add=None,
            emit_stats=True):
    """x: (N,H,W,cin_p) bf16.
       wk: (3, 3*cin_p, cout_p) bf16   (non-upsample, taps K-stacked)  or
           (8, 2*cin_p, cout_p) bf16   (upsample, parity/group-merged taps).
       Returns bf16 (N,[2]H,[2]W,cout_p) and, if emit_stats, per-channel (sum, sumsq)."""
    assert not (upsample and add is not None)
    N, H, W, cin_p = x.shape
    cout_p = wk.shape[-1]
    xp = jnp.pad(x, ((0, 0), (1, 1), (1, 1), (0, 0)))
    per_row = (8 * W * cout_p * 2) if upsample else (W * cout_p * 2)
    th = _largest_divisor(H, max(1, _TILE_BUDGET // per_row))
    grid = (N, H // th)

    kernel = _make_conv3x3_kernel(th=th, W=W, H=H, cin_p=cin_p, cout_p=cout_p,
                                  relu_in=relu_in, act=act, upsample=upsample,
                                  has_add=add is not None, emit_stats=emit_stats)

    in_specs = [
        pl.BlockSpec((1, H + 2, W + 2, cin_p), lambda n, i: (n, 0, 0, 0)),  # resident image
        pl.BlockSpec(wk.shape, lambda n, i: (0, 0, 0)),
        pl.BlockSpec((1, cout_p), lambda n, i: (0, 0)),
        pl.BlockSpec((1, cin_p), lambda n, i: (0, 0)),
        pl.BlockSpec((1, cin_p), lambda n, i: (0, 0)),
    ]
    args = [xp, wk, b, scale, shift]
    if add is not None:
        in_specs.append(pl.BlockSpec((1, th, W, cout_p), lambda n, i: (n, i, 0, 0)))
        args.append(add)

    if upsample:
        main_shape = jax.ShapeDtypeStruct((N, H, 2, W, 2 * cout_p), jnp.bfloat16)
        main_spec = pl.BlockSpec((1, th, 2, W, 2 * cout_p), lambda n, i: (n, i, 0, 0, 0))
    else:
        main_shape = jax.ShapeDtypeStruct((N, H, W, cout_p), jnp.bfloat16)
        main_spec = pl.BlockSpec((1, th, W, cout_p), lambda n, i: (n, i, 0, 0))

    if emit_stats:
        out_shape = (main_shape,
                     jax.ShapeDtypeStruct((1, cout_p), jnp.float32),
                     jax.ShapeDtypeStruct((1, cout_p), jnp.float32))
        out_specs = (main_spec,
                     pl.BlockSpec((1, cout_p), lambda n, i: (0, 0)),
                     pl.BlockSpec((1, cout_p), lambda n, i: (0, 0)))
        sem = ("arbitrary", "arbitrary")      # stats accumulate across the whole grid
    else:
        out_shape = main_shape
        out_specs = main_spec
        sem = ("parallel", "parallel")

    res = pl.pallas_call(
        kernel,
        out_shape=out_shape,
        grid=grid,
        in_specs=in_specs,
        out_specs=out_specs,
        compiler_params=pltpu.CompilerParams(dimension_semantics=sem,
                                             vmem_limit_bytes=_VMEM_LIMIT),
    )(*args)

    if emit_stats:
        out, s, q = res
    else:
        out, s, q = res, None, None
    if upsample:
        out = out.reshape(N, 2 * H, 2 * W, cout_p)   # contiguous de-parity reshape
    return (out, s, q) if emit_stats else out


def _conv1x1_up_kernel(x_ref, w_ref, b_ref, o_ref):
    x = x_ref[0]                                       # (th, W, cin_p) bf16
    th_, W_, cin_p = x.shape
    cout_p = w_ref.shape[-1]
    y = jnp.dot(x.reshape(th_ * W_, cin_p), w_ref[...],
                preferred_element_type=jnp.float32) + b_ref[...]
    y = y.reshape(th_, W_, cout_p).astype(o_ref.dtype)
    for da in range(2):                                 # duplicate rows/cols directly into the
        for db in range(2):                             # four parity lane-slices (no concat temp)
            o_ref[0, :, da, :, db * cout_p:(db + 1) * cout_p] = y


def conv1x1_upsample(x, w, b):
    """1x1 conv fused with the 2x nearest upsample of the shortcut path."""
    N, H, W, cin_p = x.shape
    cout_p = w.shape[-1]
    th = _largest_divisor(H, max(1, _TILE_BUDGET // (8 * W * cout_p * 2)))
    grid = (N, H // th)
    out = pl.pallas_call(
        _conv1x1_up_kernel,
        out_shape=jax.ShapeDtypeStruct((N, H, 2, W, 2 * cout_p), jnp.bfloat16),
        grid=grid,
        in_specs=[
            pl.BlockSpec((1, th, W, cin_p), lambda n, i: (n, i, 0, 0)),
            pl.BlockSpec((cin_p, cout_p), lambda n, i: (0, 0)),
            pl.BlockSpec((1, cout_p), lambda n, i: (0, 0)),
        ],
        out_specs=pl.BlockSpec((1, th, 2, W, 2 * cout_p), lambda n, i: (n, i, 0, 0, 0)),
        compiler_params=pltpu.CompilerParams(
            dimension_semantics=("parallel", "parallel"),
            vmem_limit_bytes=_VMEM_LIMIT),
    )(x, w, b)
    return out.reshape(N, 2 * H, 2 * W, cout_p)


# ----------------------------------------------------------------------------
# Box relational embedding (tiny elementwise geometry prep — JAX glue)
# ----------------------------------------------------------------------------

def box_relational_embedding(bbox, dim_g=64, wave_len=1000.0):
    x_min, y_min, x_max, y_max = jnp.split(bbox, 4, axis=-1)        # each (B, O, 1)
    cx = (x_min + x_max) * 0.5
    cy = (y_min + y_max) * 0.5
    w = x_max - x_min + 1.0
    h = y_max - y_min + 1.0
    delta_x = cx - jnp.transpose(cx, (0, 2, 1))
    delta_x = jnp.log(jnp.maximum(jnp.abs(delta_x / w), 1e-3))
    delta_y = cy - jnp.transpose(cy, (0, 2, 1))
    delta_y = jnp.log(jnp.maximum(jnp.abs(delta_y / h), 1e-3))
    delta_w = jnp.log(w / jnp.transpose(w, (0, 2, 1)))
    delta_h = jnp.log(h / jnp.transpose(h, (0, 2, 1)))
    pos = jnp.stack([delta_x, delta_y, delta_w, delta_h], axis=-1)  # (B, O, O, 4)
    feat_range = jnp.arange(dim_g // 8, dtype=jnp.float32)
    dim_mat = 1.0 / (wave_len ** (feat_range / (dim_g / 8)))
    mul = 100.0 * pos[..., None] * dim_mat
    mul = mul.reshape(pos.shape[0], pos.shape[1], pos.shape[2], -1)
    return jnp.concatenate([jnp.sin(mul), jnp.cos(mul)], axis=-1)    # (B, O, O, 64)


# ----------------------------------------------------------------------------
# Parameter init (orthogonal_ + spectral_norm, padded/packed for the kernels)
# ----------------------------------------------------------------------------

def orthogonal(key, shape):
    rows = shape[0]
    cols = int(np.prod(shape[1:]))
    n, m = max(rows, cols), min(rows, cols)
    a = jax.random.normal(key, (n, m), dtype=jnp.float32)
    q, r = jnp.linalg.qr(a)
    q = q * jnp.sign(jnp.diagonal(r))
    if rows < cols:
        q = q.T
    return q.reshape(shape).astype(jnp.float32)


def spectral_norm_weight(w, n_iter=20):
    wm = w.reshape(w.shape[0], -1)
    v = jnp.ones((wm.shape[1],), jnp.float32) / np.sqrt(wm.shape[1])
    u = wm @ v
    for _ in range(n_iter):
        u = wm @ v
        u = u / (jnp.linalg.norm(u) + 1e-12)
        v = wm.T @ u
        v = v / (jnp.linalg.norm(v) + 1e-12)
    sigma = u @ (wm @ v)
    return w / sigma


def _conv3_raw(key, cin, cout):
    w = spectral_norm_weight(orthogonal(key, (cout, cin, 3, 3)))
    w = jnp.transpose(w, (2, 3, 1, 0))                               # (3,3,cin,cout)
    return jnp.pad(w, ((0, 0), (0, 0), (0, _cp(cin) - cin), (0, _cp(cout) - cout)))


def _pack_conv3(w):
    """(3,3,cin_p,cout_p) -> (3, 3*cin_p, cout_p): kw taps folded into the contraction dim."""
    kh, kw, cin_p, cout_p = w.shape
    return w.reshape(kh, kw * cin_p, cout_p).astype(jnp.bfloat16)


# tap-merge sets for the nearest-2x-upsample parity decomposition: key = (parity, group)
_UP_TAPS = {(0, 0): (0,), (0, 1): (1, 2), (1, 0): (0, 1), (1, 1): (2,)}


def _pack_conv3_upsample(w):
    """(3,3,cin_p,cout_p) -> (8, 2*cin_p, cout_p): statically merged parity taps, gc along K."""
    _, _, cin_p, cout_p = w.shape
    blocks = []
    for da in range(2):
        for db in range(2):
            for gr in range(2):
                per_gc = []
                for gc in range(2):
                    m = jnp.zeros((cin_p, cout_p), jnp.float32)
                    for kh in _UP_TAPS[(da, gr)]:
                        for kw_ in _UP_TAPS[(db, gc)]:
                            m = m + w[kh, kw_]
                    per_gc.append(m)
                blocks.append(jnp.concatenate(per_gc, axis=0))        # (2*cin_p, cout_p)
    return jnp.stack(blocks, axis=0).astype(jnp.bfloat16)             # (8, 2*cin_p, cout_p)


def init_params(key, ch=4, z_dim=128, num_classes=10, output_dim=3):
    num_w = 128 + 180  # 308
    keys = iter(jax.random.split(key, 64))
    P = {}
    P["label_embedding"] = orthogonal(next(keys), (num_classes, 180))

    ctx = {}
    wq = orthogonal(next(keys), (num_w, num_w)).T
    wk = orthogonal(next(keys), (num_w, num_w)).T
    wv = orthogonal(next(keys), (num_w, num_w)).T
    ctx["Wqkv"] = jnp.concatenate([wq, wk, wv], axis=1)              # fused Q|K|V (308, 924)
    ctx["bqkv"] = jnp.zeros((3 * num_w,), jnp.float32)
    ctx["Wo"] = orthogonal(next(keys), (num_w, num_w)).T
    ctx["bo"] = jnp.zeros((num_w,), jnp.float32)
    ctx["Wg"] = orthogonal(next(keys), (1, 64)).T                    # (64, 1)
    ctx["bg"] = jnp.zeros((1,), jnp.float32)
    ctx["ln0_g"] = jnp.ones((num_w,), jnp.float32)
    ctx["ln0_b"] = jnp.zeros((num_w,), jnp.float32)
    ctx["ln_g"] = jnp.ones((num_w,), jnp.float32)
    ctx["ln_b"] = jnp.zeros((num_w,), jnp.float32)
    P["context"] = ctx

    fc_w = spectral_norm_weight(orthogonal(next(keys), (4 * 4 * 16 * ch, z_dim)))
    P["fc_w"] = fc_w.T
    P["fc_b"] = jnp.zeros((4 * 4 * 16 * ch,), jnp.float32)

    def conv1_params(k, cin, cout):
        w = spectral_norm_weight(orthogonal(k, (cout, cin, 1, 1)))
        w = jnp.transpose(w.reshape(cout, cin), (1, 0))
        w = jnp.pad(w, ((0, _cp(cin) - cin), (0, _cp(cout) - cout))).astype(jnp.bfloat16)
        return w, jnp.zeros((1, _cp(cout)), jnp.float32)

    def bn_params(c):
        return (jnp.pad(jnp.ones((c,), jnp.float32), (0, _cp(c) - c)),
                jnp.zeros((_cp(c),), jnp.float32))

    def resblock_params(cin, cout):
        p = {}
        p["conv1_w"] = _pack_conv3_upsample(_conv3_raw(next(keys), cin, cout))
        p["conv1_b"] = jnp.zeros((1, _cp(cout)), jnp.float32)
        p["conv2_w"] = _pack_conv3(_conv3_raw(next(keys), cout, cout))
        p["conv2_b"] = jnp.zeros((1, _cp(cout)), jnp.float32)
        p["csc_w"], p["csc_b"] = conv1_params(next(keys), cin, cout)
        p["bn1_g"], p["bn1_b"] = bn_params(cin)
        p["bn2_g"], p["bn2_b"] = bn_params(cout)
        return p

    chans = [16 * ch, 16 * ch, 8 * ch, 4 * ch, 2 * ch, ch]
    for i in range(5):
        P["res%d" % (i + 1)] = resblock_params(chans[i], chans[i + 1])

    P["final_bn_g"], P["final_bn_b"] = bn_params(ch)
    P["final_conv_w"] = _pack_conv3(_conv3_raw(next(keys), ch, output_dim))
    P["final_conv_b"] = jnp.zeros((1, _cp(output_dim)), jnp.float32)
    return P


# ----------------------------------------------------------------------------
# Module forward
# ----------------------------------------------------------------------------

def context_forward(p, x, bbox, y):
    """BoxMultiHeadedAttention(h=1, d_model=308).forward(x, x, x, bbox, mask=y)."""
    B, O, D = x.shape
    x2 = x.reshape(B * O, D)
    emb = box_relational_embedding(bbox)                              # (B, O, O, 64)
    qkv = dense(x2, p["Wqkv"], p["bqkv"])                             # fused Q/K/V projection
    q = qkv[:, 0 * D:1 * D].reshape(B, O, D)
    k = qkv[:, 1 * D:2 * D].reshape(B, O, D)
    v = qkv[:, 2 * D:3 * D].reshape(B, O, D)
    wg = dense(emb.reshape(B * O * O, 64), p["Wg"], p["bg"], act="relu").reshape(B, O, O)
    att = box_attention(q, k, v, wg, y.astype(jnp.float32))           # (B, O, D)
    # h == 1: the source's transpose(1,2)+view is a no-op on (B, 1, O, d_k).
    out = layer_norm_residual(att.reshape(B * O, D), x2, p["ln0_g"], p["ln0_b"])
    out2 = dense(out, p["Wo"], p["bo"])                               # dropout p=0.0 -> identity
    out = layer_norm_residual(out2, out, p["ln_g"], p["ln_b"])
    return out.reshape(B, O, D)


def resblock_forward(p, x, stats):
    # TODO(synk): SpatialAdaptiveSynBatchNorm2d is undefined in the provided source; it is
    # implemented here as plain train-mode synchronized batch-norm (no (w, bbox) modulation).
    N, H, W, _ = x.shape
    scale1, shift1 = bn_affine(stats, p["bn1_g"], p["bn1_b"])
    sc = conv1x1_upsample(x, p["csc_w"], p["csc_b"])                  # shortcut (fused upsample)
    h, s1, q1 = conv3x3(x, p["conv1_w"], p["conv1_b"], scale1, shift1,
                        relu_in=True, upsample=True, emit_stats=True) # BN1+ReLU+up+conv1 fused
    cnt = N * (2 * H) * (2 * W)
    scale2, shift2 = bn_affine((s1, q1, cnt), p["bn2_g"], p["bn2_b"])
    out, s2, q2 = conv3x3(h, p["conv2_w"], p["conv2_b"], scale2, shift2,
                          relu_in=True, upsample=False, add=sc,
                          emit_stats=True)                            # BN2+ReLU+conv2+shortcut
    return out, (s2, q2, cnt)


def context_aware_generator_forward(P, z, bbox, y, z_im, ch=4):
    B, O, _ = z.shape
    label_emb = jnp.take(P["label_embedding"], y, axis=0)             # (B, O, 180)
    latent = jnp.concatenate(
        [z.reshape(B * O, -1), label_emb.reshape(B * O, -1)], axis=1
    ).reshape(B, O, -1)                                               # (B, O, 308); mapping=identity
    w = context_forward(P["context"], latent, bbox, y)
    w = w.reshape(B * O, -1)
    # TODO(synk): MaskRegressNet is undefined in the provided source; its output only feeds the
    # (also undefined) SpatialAdaptiveSynBatchNorm2d, so `w`/bbox conditioning stops here.
    _ = w

    x = dense(z_im, P["fc_w"], P["fc_b"])                             # (B, 4*4*16*ch) f32
    x = x.reshape(B, 16 * ch, 4, 4).transpose(0, 2, 3, 1)             # NCHW view -> NHWC
    c0 = 16 * ch
    x = jnp.pad(x, ((0, 0), (0, 0), (0, 0), (0, _cp(c0) - c0)))
    stats = channel_stats(x)                                          # f32 stats for the first BN
    x = x.astype(jnp.bfloat16)

    for name in ("res1", "res2", "res3", "res4", "res5"):
        x, stats = resblock_forward(P[name], x, stats)

    scale, shift = bn_affine(stats, P["final_bn_g"], P["final_bn_b"])
    x = conv3x3(x, P["final_conv_w"], P["final_conv_b"], scale, shift,
                relu_in=True, upsample=False, act="tanh", emit_stats=False)
    x = x[..., :3].astype(jnp.float32)                                # drop lane padding (Cout=3)
    return x.transpose(0, 3, 1, 2)                                    # NHWC -> NCHW


# ----------------------------------------------------------------------------

if __name__ == "__main__":
    key = jax.random.PRNGKey(0)
    k_param, k_z, k_box, k_y, k_zim = jax.random.split(key, 5)

    ch = 4           # small ch for a runnable example (module default is 64)
    B, O = 2, 4      # batch of 2 images, 4 objects each

    params = init_params(k_param, ch=ch)

    z = jax.random.normal(k_z, (B, O, 128), dtype=jnp.float32)
    xy = jax.random.uniform(k_box, (B, O, 2), minval=0.0, maxval=0.5)
    wh = jax.random.uniform(jax.random.fold_in(k_box, 1), (B, O, 2), minval=0.1, maxval=0.5)
    bbox = jnp.concatenate([xy, xy + wh], axis=-1).astype(jnp.float32)  # (x_min,y_min,x_max,y_max)
    y = jax.random.randint(k_y, (B, O), 0, 10)   # labels; label 0 hits the mask path (as in source)
    z_im = jax.random.normal(k_zim, (B, 128), dtype=jnp.float32)

    out = context_aware_generator_forward(params, z, bbox, y, z_im, ch=ch)
    out = jax.block_until_ready(out)
    assert out.shape == (B, 3, 128, 128), out.shape
    assert bool(jnp.all(jnp.isfinite(out)))
    print("KERNEL_OK")
</pallas_src>

<mosaic_0001>
module attributes {stable_mosaic.version = 11 : i64} {
  func.func @_dense_kernel(%arg0: i32, %arg1: memref<8x308xf32, #tpu.memory_space<vmem>>, %arg2: memref<308x924xf32, #tpu.memory_space<vmem>>, %arg3: memref<1x924xf32, #tpu.memory_space<vmem>>, %arg4: memref<8x924xf32, #tpu.memory_space<vmem>>) attributes {dimension_semantics = [#tpu.dimension_semantics<arbitrary>], iteration_bounds = array<i64: 1>, scalar_prefetch = 0 : i64, scratch_operands = 0 : i64, tpu.core_type = #tpu.core_type<tc>, window_params = [{pipeline_mode = #tpu.pipeline_mode<synchronous>, transform_indices = @transform_0, window_bounds = array<i64: 8, 308>}, {pipeline_mode = #tpu.pipeline_mode<synchronous>, transform_indices = @transform_1, window_bounds = array<i64: 308, 924>}, {pipeline_mode = #tpu.pipeline_mode<synchronous>, transform_indices = @transform_2, window_bounds = array<i64: 1, 924>}, {pipeline_mode = #tpu.pipeline_mode<synchronous>, transform_indices = @transform_3, window_bounds = array<i64: 8, 924>}]} {
    %c0 = arith.constant 0 : index
    %c0_0 = arith.constant 0 : index
    %0 = vector.load %arg1[%c0, %c0_0] : memref<8x308xf32, #tpu.memory_space<vmem>>, vector<8x308xf32>
    %c0_1 = arith.constant 0 : index
    %c0_2 = arith.constant 0 : index
    %1 = vector.load %arg2[%c0_1, %c0_2] : memref<308x924xf32, #tpu.memory_space<vmem>>, vector<308x924xf32>
    %cst = arith.constant dense<0.000000e+00> : vector<8x924xf32>
    %2 = tpu.matmul %0, %1, %cst {dimension_numbers = #tpu.dot_dimension_numbers<[1], [0], [0], [1], [0, 0, 1, 1], [], []>} : vector<8x308xf32>, vector<308x924xf32>, vector<8x924xf32> -> vector<8x924xf32>
    %c0_3 = arith.constant 0 : index
    %c0_4 = arith.constant 0 : index
    %3 = vector.load %arg3[%c0_3, %c0_4] : memref<1x924xf32, #tpu.memory_space<vmem>>, vector<1x924xf32>
    %4 = vector.broadcast %3 : vector<1x924xf32> to vector<8x924xf32>
    %5 = arith.addf %2, %4 : vector<8x924xf32>
    %c0_5 = arith.constant 0 : index
    %c0_6 = arith.constant 0 : index
    %6 = vector.load %arg4[%c0_5, %c0_6] : memref<8x924xf32, #tpu.memory_space<vmem>>, vector<8x924xf32>
    tpu.vector_store %arg4[%c0_5, %c0_6], %5 {strides = array<i32>} : memref<8x924xf32, #tpu.memory_space<vmem>>, vector<8x924xf32>,
    return
  }
  func.func @transform_0(%arg0: i32) -> (i32, i32) {
    %c0_i32 = arith.constant 0 : i32
    %c0_i32_0 = arith.constant 0 : i32
    %c0_i32_1 = arith.constant 0 : i32
    return %c0_i32, %c0_i32_0 : i32, i32
  }
  func.func @transform_1(%arg0: i32) -> (i32, i32) {
    %c0_i32 = arith.constant 0 : i32
    %c0_i32_0 = arith.constant 0 : i32
    %c0_i32_1 = arith.constant 0 : i32
    return %c0_i32, %c0_i32_0 : i32, i32
  }
  func.func @transform_2(%arg0: i32) -> (i32, i32) {
    %c0_i32 = arith.constant 0 : i32
    %c0_i32_0 = arith.constant 0 : i32
    %c0_i32_1 = arith.constant 0 : i32
    return %c0_i32, %c0_i32_0 : i32, i32
  }
  func.func @transform_3(%arg0: i32) -> (i32, i32) {
    %c0_i32 = arith.constant 0 : i32
    %c0_i32_0 = arith.constant 0 : i32
    %c0_i32_1 = arith.constant 0 : i32
    return %c0_i32, %c0_i32_0 : i32, i32
  }
}

</mosaic_0001>

<bundles_post_ra>
// kernel: tpu_custom_call.1
= control target key start
LH: loop header
LB: loop body
LE: loop exit
PB: predicated region body
PF: predicated region fallthrough
CT: control target
= control target key end

     0   :  { %8 = vsyncpa [#allocation3], 0  ;;  %s1573_s0 = inlined_call_operand.hbm [shape: f32[8,308], index: 0, kind: input, shape index: {}]   ;;  %s1574_s1 = inlined_call_operand.hbm [shape: f32[308,924], index: 1, kind: input, shape index: {}]   ;;  %s1575_s2 = inlined_call_operand.hbm [shape: f32[1,924], index: 2, kind: input, shape index: {}]   ;;  %s1576_s3 = inlined_call_operand.hbm [shape: f32[8,924], index: 3, kind: output, shape index: {}]  }
   0x1   :  { %9 = vsyncpa [#allocation6], 0 }
   0x2   :  { %10 = vsyncpa [#allocation4], 0  ;;  %s1464_s12 = smov [#allocation5]   ;;  %s1370_s16 = scalar_lea.hbm %s1574_s1, 39936 }
   0x3   :  { %s26_s13 = sshll.u32 %s1464_s12, 4  ;;  %p1371_p0 = scmp.ne.s32.totalorder %s1574_s1, %s1370_s16  ;;  %s27_s13 = int_to_ptr.vmem [resolvable:$true] %s26_s13 }
   0x4   :  { %p1374_p1 = scmp.lt.u32.totalorder %s1370_s16, %s1574_s1 }
   0x6   :  { %p1376_p2 = pnand %p1374_p1, %p1371_p0 }
   0x8   :  { %1379 = shalt.err (!%p1376_p2)
}
   0x9   :  { %s1380_s21 = scalar_lea.vmem %s27_s13, 39936  ;;  %p1385_p4 = scmp.lt.s32.totalorder %s27_s13, %s27_s13 }
   0xa   :  { %p1381_p3 = scmp.ne.s32.totalorder %s27_s13, %s1380_s21  ;;  %p1386_p5 = scmp.lt.s32.totalorder %s1380_s21, %s1380_s21 }
   0xc   :  { %p1387_p6 = por %p1386_p5, %p1385_p4 }
   0xe   :  { %p1388_p7 = pnand %p1387_p6, %p1381_p3 }
  0x10   :  { %1391 = shalt.err (!%p1388_p7)
}
  0x11   :  { %s1465_s22 = smov 1024   ;;  %s1466_s23 = smov 64  }
  0x12   :  { %32 = dma.hbm_to_vmem [thread:$0]  %s1574_s1, 39936, %s27_s13, [#allocation6], %s1465_s22, %s1465_s22, %s1466_s23  }
  0x13   :  { %s1467_s26 = smov [#allocation2]   ;;  %s1468_s28 = smov [#allocation7]  }
  0x14   :  { %s17_s27 = sshll.u32 %s1467_s26, 4  ;;  %s39_s29 = sshll.u32 %s1468_s28, 4  ;;  %s18_s27 = int_to_ptr.vmem [resolvable:$true] %s17_s27  ;;  %s40_s29 = int_to_ptr.vmem [resolvable:$true] %s39_s29 }
  0x15   :  { %s1392_s5 = scalar_lea.hbm %s1573_s0, 384 }
  0x16   :  { %p1393_p8 = scmp.ne.s32.totalorder %s1573_s0, %s1392_s5  ;;  %p1396_p9 = scmp.lt.u32.totalorder %s1392_s5, %s1573_s0 }
  0x18   :  { %p1398_p10 = pnand %p1396_p9, %p1393_p8 }
  0x1a   :  { %1401 = shalt.err (!%p1398_p10)
}
  0x1b   :  { %s1402_s1 = scalar_lea.vmem %s18_s27, 384  ;;  %p1407_p12 = scmp.lt.s32.totalorder %s18_s27, %s18_s27 }
  0x1c   :  { %p1403_p11 = scmp.ne.s32.totalorder %s18_s27, %s1402_s1  ;;  %p1408_p13 = scmp.lt.s32.totalorder %s1402_s1, %s1402_s1 }
  0x1e   :  { %p1409_p0 = por %p1408_p13, %p1407_p12 }
  0x20   :  { %p1410_p1 = pnand %p1409_p0, %p1403_p11 }
  0x22   :  { %1413 = shalt.err (!%p1410_p1)
}
  0x23   :  { %20 = dma.hbm_to_vmem [thread:$0]  %s1573_s0, 384, %s18_s27, [#allocation3]  }
  0x24   :  { %s1414_s14 = scalar_lea.hbm %s1575_s2, 128 }
  0x25   :  { %p1415_p2 = scmp.ne.s32.totalorder %s1575_s2, %s1414_s14  ;;  %p1418_p3 = scmp.lt.u32.totalorder %s1414_s14, %s1575_s2 }
  0x27   :  { %p1420_p4 = pnand %p1418_p3, %p1415_p2 }
  0x29   :  { %1423 = shalt.err (!%p1420_p4)
}
  0x2a   :  { %s1424_s19 = scalar_lea.vmem %s40_s29, 128  ;;  %p1429_p6 = scmp.lt.s32.totalorder %s40_s29, %s40_s29 }
  0x2b   :  { %p1425_p5 = scmp.ne.s32.totalorder %s40_s29, %s1424_s19  ;;  %p1430_p7 = scmp.lt.s32.totalorder %s1424_s19, %s1424_s19 }
  0x2d   :  { %p1431_p8 = por %p1430_p7, %p1429_p6 }
  0x2f   :  { %p1432_p9 = pnand %p1431_p8, %p1425_p5 }
  0x31   :  { %1435 = shalt.err (!%p1432_p9)
}
  0x32   :  { %42 = dma.hbm_to_vmem [thread:$0]  %s1575_s2, 128, %s40_s29, [#allocation6]  }
  0x33   :  { %1458 = dma.done.wait [#allocation3], 384  }
  0x34   :  { %1459 = vsyncadd [#allocation3], 4294966912 }
  0x35   :  { %1460 = dma.done.wait [#allocation6], 40064  }
  0x36   :  { %1461 = vsyncadd [#allocation6], 4294927232  ;;  %v56_v0 = vld [vmem:[#allocation5 + $0x8] sm:$0xff]  ;;  %v58_v2 = vld [vmem:[#allocation5 + $0x18] sm:$0xff]  ;;  %vm413_vm0 = vcmask 1043456   ;;  %vm409_vm1 = vcmask 424960  }
  0x37   :  { %v64_v1 = vld [vmem:[#allocation5 + $0x48] sm:$0xff]  ;;  %v66_v4 = vld [vmem:[#allocation5 + $0x58] sm:$0xff]  ;;  %v55_v5 = vld [vmem:[#allocation5] sm:$0xff]  ;;  %s1470_s2 = smov [#allocation8]   ;;  %vm1013_vm2 = vcmask 228352  }
  0x38   :  { %v1043_v3 = vpack.c.bf16 %v64_v1, %v56_v0  ;;  %v63_v6 = vld [vmem:[#allocation5 + $0x40] sm:$0xff]  ;;  %v1119_v7 = vpack.c.bf16 %v66_v4, %v58_v2  ;;  %v57_v9 = vld [vmem:[#allocation5 + $0x10] sm:$0xff]  ;;  %v72_v11 = vld [vmem:[#allocation5 + $0x88] sm:$0xff]  ;;  %s1021_s21 = sshll.u32 %s1470_s2, 4  ;;  %s1022_s21 = int_to_ptr.vmem [resolvable:$true] %s1021_s21 }
  0x39   :  { %v1045_v8 = vpack.c.bf16 %v63_v6, %v55_v5  ;;  %v65_v10 = vld [vmem:[#allocation5 + $0x50] sm:$0xff]  ;;  %v80_v13 = vld [vmem:[#allocation5 + $0xc8] sm:$0xff]  ;;  %v74_v14 = vld [vmem:[#allocation5 + $0x98] sm:$0xff]  ;;  %s1436_s22 = scalar_lea.vmem %s1022_s21, 1024  ;;  %p1441_p11 = scmp.lt.s32.totalorder %s1022_s21, %s1022_s21 }
  0x3a   :  { %1044 = vmatprep.subr.bf16.mxu0 %v1043_v3  ;;  %v1121_v12 = vpack.c.bf16 %v65_v10, %v57_v9  ;;  %v82_v15 = vld [vmem:[#allocation5 + $0xd8] sm:$0xff]  ;;  %1120 = vmatprep.subr.bf16.mxu1 %v1119_v7  ;;  %v1047_v16 = vpack.c.bf16 %v80_v13, %v72_v11  ;;  %v71_v18 = vld [vmem:[#allocation5 + $0x80] sm:$0xff]  ;;  %v73_v20 = vld [vmem:[#allocation5 + $0x90] sm:$0xff]  ;;  %p1437_p10 = scmp.ne.s32.totalorder %s1022_s21, %s1436_s22  ;;  %p1442_p12 = scmp.lt.s32.totalorder %s1436_s22, %s1436_s22 }
  0x3b   :  { %1046 = vmatpush1.bf16.msra.mxu0 %v1045_v8  ;;  %v1123_v17 = vpack.c.bf16 %v82_v15, %v74_v14  ;;  %v79_v19 = vld [vmem:[#allocation5 + $0xc0] sm:$0xff]  ;;  %v81_v22 = vld [vmem:[#allocation5 + $0xd0] sm:$0xff]  ;;  %v88_v23 = vld [vmem:[#allocation5 + $0x108] sm:$0xff] }
  0x3c   :  { %1122 = vmatpush1.bf16.msra.mxu1 %v1121_v12  ;;  %v1049_v21 = vpack.c.bf16 %v79_v19, %v71_v18  ;;  %v96_v24 = vld [vmem:[#allocation5 + $0x148] sm:$0xff]  ;;  %1048 = vmatprep.subr.bf16.mxu0 %v1047_v16  ;;  %v1125_v25 = vpack.c.bf16 %v81_v22, %v73_v20  ;;  %v90_v27 = vld [vmem:[#allocation5 + $0x118] sm:$0xff]  ;;  %v87_v29 = vld [vmem:[#allocation5 + $0x100] sm:$0xff]  ;;  %p1443_p13 = por %p1442_p12, %p1441_p11 }
  0x3d   :  { %1124 = vmatprep.subr.bf16.mxu1 %v1123_v17  ;;  %v1051_v26 = vpack.c.bf16 %v96_v24, %v88_v23  ;;  %v98_v28 = vld [vmem:[#allocation5 + $0x158] sm:$0xff]  ;;  %v95_v31 = vld [vmem:[#allocation5 + $0x140] sm:$0xff]  ;;  %v89_v32 = vld [vmem:[#allocation5 + $0x110] sm:$0xff] }
  0x3e   :  { %v1127_v30 = vpack.c.bf16 %v98_v28, %v90_v27  ;;  %v97_v33 = vld [vmem:[#allocation5 + $0x150] sm:$0xff]  ;;  %v1053_v34 = vpack.c.bf16 %v95_v31, %v87_v29  ;;  %v104_v35 = vld [vmem:[#allocation5 + $0x188] sm:$0xff]  ;;  %v106_v37 = vld [vmem:[#allocation5 + $0x198] sm:$0xff]  ;;  %p1444_p0 = pnand %p1443_p13, %p1437_p10 }
  0x3f   :  { %1050 = vmatpush1.bf16.msra.mxu0 %v1049_v21  ;;  %v112_v36 = vld [vmem:[#allocation5 + $0x1c8] sm:$0xff]  ;;  %v1129_v38 = vpack.c.bf16 %v97_v33, %v89_v32  ;;  %v114_v40 = vld [vmem:[#allocation5 + $0x1d8] sm:$0xff]  ;;  %v103_v41 = vld [vmem:[#allocation5 + $0x180] sm:$0xff] }
  0x40   :  { %1126 = vmatpush1.bf16.msra.mxu1 %v1125_v25  ;;  %1052 = vmatprep.subr.bf16.mxu0 %v1051_v26  ;;  %v1055_v39 = vpack.c.bf16 %v112_v36, %v104_v35  ;;  %v111_v42 = vld [vmem:[#allocation5 + $0x1c0] sm:$0xff]  ;;  %v1131_v43 = vpack.c.bf16 %v114_v40, %v106_v37  ;;  %v105_v44 = vld [vmem:[#allocation5 + $0x190] sm:$0xff]  ;;  %v120_v46 = vld [vmem:[#allocation5 + $0x208] sm:$0xff] }
  0x41   :  { %1128 = vmatprep.subr.bf16.mxu1 %v1127_v30  ;;  %v113_v45 = vld [vmem:[#allocation5 + $0x1d0] sm:$0xff]  ;;  %v128_v47 = vld [vmem:[#allocation5 + $0x248] sm:$0xff]  ;;  %v122_v48 = vld [vmem:[#allocation5 + $0x218] sm:$0xff]  ;;  %v1057_v50 = vpack.c.bf16 %v111_v42, %v103_v41 }
  0x42   :  { %v130_v49 = vld [vmem:[#allocation5 + $0x258] sm:$0xff]  ;;  %v1133_v51 = vpack.c.bf16 %v113_v45, %v105_v44  ;;  %v1059_v52 = vpack.c.bf16 %v128_v47, %v120_v46  ;;  %v119_v53 = vld [vmem:[#allocation5 + $0x200] sm:$0xff]  ;;  %v121_v55 = vld [vmem:[#allocation5 + $0x210] sm:$0xff] }
  0x43   :  { %1054 = vmatpush1.bf16.msra.mxu0 %v1053_v34  ;;  %v127_v54 = vld [vmem:[#allocation5 + $0x240] sm:$0xff]  ;;  %v1135_v56 = vpack.c.bf16 %v130_v49, %v122_v48  ;;  %v129_v57 = vld [vmem:[#allocation5 + $0x250] sm:$0xff]  ;;  %v136_v58 = vld [vmem:[#allocation5 + $0x288] sm:$0xff] }
  0x44   :  { %1130 = vmatpush1.bf16.msra.mxu1 %v1129_v38  ;;  %1056 = vmatprep.subr.bf16.mxu0 %v1055_v39  ;;  %v144_v59 = vld [vmem:[#allocation5 + $0x2c8] sm:$0xff]  ;;  %v138_v60 = vld [vmem:[#allocation5 + $0x298] sm:$0xff]  ;;  %v1061_v62 = vpack.c.bf16 %v127_v54, %v119_v53  ;;  %v1137_v63 = vpack.c.bf16 %v129_v57, %v121_v55  ;;  %v135_v1 = vld [vmem:[#allocation5 + $0x280] sm:$0xff] }
  0x45   :  { %1132 = vmatprep.subr.bf16.mxu1 %v1131_v43  ;;  %v146_v61 = vld [vmem:[#allocation5 + $0x2d8] sm:$0xff]  ;;  %v1063_v0 = vpack.c.bf16 %v144_v59, %v136_v58  ;;  %v143_v2 = vld [vmem:[#allocation5 + $0x2c0] sm:$0xff]  ;;  %v137_v3 = vld [vmem:[#allocation5 + $0x290] sm:$0xff] }
  0x46   :  { %v1139_v4 = vpack.c.bf16 %v146_v61, %v138_v60  ;;  %v145_v5 = vld [vmem:[#allocation5 + $0x2d0] sm:$0xff]  ;;  %v152_v6 = vld [vmem:[#allocation5 + $0x308] sm:$0xff]  ;;  %v154_v8 = vld [vmem:[#allocation5 + $0x318] sm:$0xff]  ;;  %v1065_v10 = vpack.c.bf16 %v143_v2, %v135_v1 }
  0x47   :  { %1058 = vmatpush1.bf16.msra.mxu0 %v1057_v50  ;;  %v160_v7 = vld [vmem:[#allocation5 + $0x348] sm:$0xff]  ;;  %v162_v9 = vld [vmem:[#allocation5 + $0x358] sm:$0xff]  ;;  %v1141_v11 = vpack.c.bf16 %v145_v5, %v137_v3  ;;  %v151_v13 = vld [vmem:[#allocation5 + $0x300] sm:$0xff] }
  0x48   :  { %1134 = vmatpush1.bf16.msra.mxu1 %v1133_v51  ;;  %1060 = vmatprep.subr.bf16.mxu0 %v1059_v52  ;;  %v1067_v12 = vpack.c.bf16 %v160_v7, %v152_v6  ;;  %v159_v14 = vld [vmem:[#allocation5 + $0x340] sm:$0xff]  ;;  %v153_v15 = vld [vmem:[#allocation5 + $0x310] sm:$0xff]  ;;  %v1143_v16 = vpack.c.bf16 %v162_v9, %v154_v8  ;;  %v168_v18 = vld [vmem:[#allocation5 + $0x388] sm:$0xff] }
  0x49   :  { %1136 = vmatprep.subr.bf16.mxu1 %v1135_v56  ;;  %v161_v17 = vld [vmem:[#allocation5 + $0x350] sm:$0xff]  ;;  %v176_v19 = vld [vmem:[#allocation5 + $0x3c8] sm:$0xff]  ;;  %v170_v20 = vld [vmem:[#allocation5 + $0x398] sm:$0xff]  ;;  %v1069_v22 = vpack.c.bf16 %v159_v14, %v151_v13 }
  0x4a   :  { %v178_v21 = vld [vmem:[#allocation5 + $0x3d8] sm:$0xff]  ;;  %v1145_v23 = vpack.c.bf16 %v161_v17, %v153_v15  ;;  %v1071_v24 = vpack.c.bf16 %v176_v19, %v168_v18  ;;  %v167_v25 = vld [vmem:[#allocation5 + $0x380] sm:$0xff]  ;;  %v169_v27 = vld [vmem:[#allocation5 + $0x390] sm:$0xff] }
  0x4b   :  { %1062 = vmatpush1.bf16.msra.mxu0 %v1061_v62  ;;  %v175_v26 = vld [vmem:[#allocation5 + $0x3c0] sm:$0xff]  ;;  %v1147_v28 = vpack.c.bf16 %v178_v21, %v170_v20  ;;  %v177_v29 = vld [vmem:[#allocation5 + $0x3d0] sm:$0xff]  ;;  %v184_v30 = vld [vmem:[#allocation5 + $0x408] sm:$0xff] }
  0x4c   :  { %1138 = vmatpush1.bf16.msra.mxu1 %v1137_v63  ;;  %1064 = vmatprep.subr.bf16.mxu0 %v1063_v0  ;;  %v192_v31 = vld [vmem:[#allocation5 + $0x448] sm:$0xff]  ;;  %v186_v32 = vld [vmem:[#allocation5 + $0x418] sm:$0xff]  ;;  %v1073_v34 = vpack.c.bf16 %v175_v26, %v167_v25  ;;  %v1149_v35 = vpack.c.bf16 %v177_v29, %v169_v27  ;;  %v183_v37 = vld [vmem:[#allocation5 + $0x400] sm:$0xff] }
  0x4d   :  { %1140 = vmatprep.subr.bf16.mxu1 %v1139_v4  ;;  %v194_v33 = vld [vmem:[#allocation5 + $0x458] sm:$0xff]  ;;  %v1075_v36 = vpack.c.bf16 %v192_v31, %v184_v30  ;;  %v191_v38 = vld [vmem:[#allocation5 + $0x440] sm:$0xff]  ;;  %v185_v39 = vld [vmem:[#allocation5 + $0x410] sm:$0xff] }
  0x4e   :  { %v1151_v40 = vpack.c.bf16 %v194_v33, %v186_v32  ;;  %v193_v41 = vld [vmem:[#allocation5 + $0x450] sm:$0xff]  ;;  %v200_v42 = vld [vmem:[#allocation5 + $0x488] sm:$0xff]  ;;  %v202_v44 = vld [vmem:[#allocation5 + $0x498] sm:$0xff]  ;;  %v1077_v46 = vpack.c.bf16 %v191_v38, %v183_v37 }
  0x4f   :  { %1066 = vmatpush1.bf16.msra.mxu0 %v1065_v10  ;;  %v208_v43 = vld [vmem:[#allocation5 + $0x4c8] sm:$0xff]  ;;  %v210_v45 = vld [vmem:[#allocation5 + $0x4d8] sm:$0xff]  ;;  %v1153_v47 = vpack.c.bf16 %v193_v41, %v185_v39  ;;  %v199_v49 = vld [vmem:[#allocation5 + $0x480] sm:$0xff] }
  0x50   :  { %1142 = vmatpush1.bf16.msra.mxu1 %v1141_v11  ;;  %1068 = vmatprep.subr.bf16.mxu0 %v1067_v12  ;;  %v1079_v48 = vpack.c.bf16 %v208_v43, %v200_v42  ;;  %v207_v50 = vld [vmem:[#allocation5 + $0x4c0] sm:$0xff]  ;;  %v201_v51 = vld [vmem:[#allocation5 + $0x490] sm:$0xff]  ;;  %v1155_v52 = vpack.c.bf16 %v210_v45, %v202_v44  ;;  %v216_v54 = vld [vmem:[#allocation5 + $0x508] sm:$0xff] }
  0x51   :  { %1144 = vmatprep.subr.bf16.mxu1 %v1143_v16  ;;  %v209_v53 = vld [vmem:[#allocation5 + $0x4d0] sm:$0xff]  ;;  %v224_v55 = vld [vmem:[#allocation5 + $0x548] sm:$0xff]  ;;  %v218_v56 = vld [vmem:[#allocation5 + $0x518] sm:$0xff]  ;;  %v1081_v58 = vpack.c.bf16 %v207_v50, %v199_v49 }
  0x52   :  { %v226_v57 = vld [vmem:[#allocation5 + $0x558] sm:$0xff]  ;;  %v1157_v59 = vpack.c.bf16 %v209_v53, %v201_v51  ;;  %v1083_v60 = vpack.c.bf16 %v224_v55, %v216_v54  ;;  %v215_v61 = vld [vmem:[#allocation5 + $0x500] sm:$0xff]  ;;  %v217_v63 = vld [vmem:[#allocation5 + $0x510] sm:$0xff] }
  0x53   :  { %1070 = vmatpush1.bf16.msra.mxu0 %v1069_v22  ;;  %v223_v62 = vld [vmem:[#allocation5 + $0x540] sm:$0xff]  ;;  %v1159_v0 = vpack.c.bf16 %v226_v57, %v218_v56  ;;  %v225_v1 = vld [vmem:[#allocation5 + $0x550] sm:$0xff]  ;;  %v232_v2 = vld [vmem:[#allocation5 + $0x588] sm:$0xff] }
  0x54   :  { %1146 = vmatpush1.bf16.msra.mxu1 %v1145_v23  ;;  %1072 = vmatprep.subr.bf16.mxu0 %v1071_v24  ;;  %v240_v3 = vld [vmem:[#allocation5 + $0x5c8] sm:$0xff]  ;;  %v234_v4 = vld [vmem:[#allocation5 + $0x598] sm:$0xff]  ;;  %v1085_v6 = vpack.c.bf16 %v223_v62, %v215_v61  ;;  %v231_v7 = vld [vmem:[#allocation5 + $0x580] sm:$0xff]  ;;  %v1161_v8 = vpack.c.bf16 %v225_v1, %v217_v63 }
  0x55   :  { %1148 = vmatprep.subr.bf16.mxu1 %v1147_v28  ;;  %v242_v5 = vld [vmem:[#allocation5 + $0x5d8] sm:$0xff]  ;;  %v1087_v9 = vpack.c.bf16 %v240_v3, %v232_v2  ;;  %v239_v10 = vld [vmem:[#allocation5 + $0x5c0] sm:$0xff]  ;;  %v233_v11 = vld [vmem:[#allocation5 + $0x590] sm:$0xff] }
  0x56   :  { %v241_v12 = vld [vmem:[#allocation5 + $0x5d0] sm:$0xff]  ;;  %v1163_v13 = vpack.c.bf16 %v242_v5, %v234_v4  ;;  %v248_v14 = vld [vmem:[#allocation5 + $0x608] sm:$0xff]  ;;  %v250_v17 = vld [vmem:[#allocation5 + $0x618] sm:$0xff]  ;;  %v1089_v19 = vpack.c.bf16 %v239_v10, %v231_v7 }
  0x57   :  { %1074 = vmatpush1.bf16.msra.mxu0 %v1073_v34  ;;  %v256_v15 = vld [vmem:[#allocation5 + $0x648] sm:$0xff]  ;;  %v1527_v16 = vld [vmem:[#allocation2 + $0x8] sm:$0xff]  ;;  %v258_v18 = vld [vmem:[#allocation5 + $0x658] sm:$0xff]  ;;  %v1165_v20 = vpack.c.bf16 %v241_v12, %v233_v11 }
  0x58   :  { %1150 = vmatpush1.bf16.msra.mxu1 %v1149_v35  ;;  %1076 = vmatprep.subr.bf16.mxu0 %v1075_v36  ;;  %v1091_v21 = vpack.c.bf16 %v256_v15, %v248_v14  ;;  %v247_v22 = vld [vmem:[#allocation5 + $0x600] sm:$0xff]  ;;  %v249_v24 = vld [vmem:[#allocation5 + $0x610] sm:$0xff]  ;;  %v1167_v25 = vpack.c.bf16 %v258_v18, %v250_v17  ;;  %v264_v27 = vld [vmem:[#allocation5 + $0x688] sm:$0xff] }
  0x59   :  { %1152 = vmatprep.subr.bf16.mxu1 %v1151_v40  ;;  %502 = vmatprep.mubr.f32.mxu0 %v1527_v16  ;;  %v255_v23 = vld [vmem:[#allocation5 + $0x640] sm:$0xff]  ;;  %v257_v26 = vld [vmem:[#allocation5 + $0x650] sm:$0xff]  ;;  %v272_v28 = vld [vmem:[#allocation5 + $0x6c8] sm:$0xff] }
  0x5a   :  { %644 = vmatprep.mubr.f32.mxu1 %v1527_v16  ;;  %v266_v29 = vld [vmem:[#allocation5 + $0x698] sm:$0xff]  ;;  %v1093_v31 = vpack.c.bf16 %v255_v23, %v247_v22  ;;  %v1169_v32 = vpack.c.bf16 %v257_v26, %v249_v24  ;;  %v1095_v33 = vpack.c.bf16 %v272_v28, %v264_v27  ;;  %v263_v34 = vld [vmem:[#allocation5 + $0x680] sm:$0xff]  ;;  %v265_v36 = vld [vmem:[#allocation5 + $0x690] sm:$0xff] }
  0x5b   :  { %1078 = vmatpush1.bf16.msra.mxu0 %v1077_v46  ;;  %v274_v30 = vld [vmem:[#allocation5 + $0x6d8] sm:$0xff]  ;;  %v271_v35 = vld [vmem:[#allocation5 + $0x6c0] sm:$0xff]  ;;  %v273_v38 = vld [vmem:[#allocation5 + $0x6d0] sm:$0xff] }
  0x5c   :  { %1154 = vmatpush1.bf16.msra.mxu1 %v1153_v47  ;;  %1080 = vmatprep.subr.bf16.mxu0 %v1079_v48  ;;  %v1171_v37 = vpack.c.bf16 %v274_v30, %v266_v29  ;;  %v280_v39 = vld [vmem:[#allocation5 + $0x708] sm:$0xff]  ;;  %v282_v41 = vld [vmem:[#allocation5 + $0x718] sm:$0xff]  ;;  %v1097_v43 = vpack.c.bf16 %v271_v35, %v263_v34  ;;  %v1173_v44 = vpack.c.bf16 %v273_v38, %v265_v36  ;;  %v279_v46 = vld [vmem:[#allocation5 + $0x700] sm:$0xff] }
  0x5d   :  { %1156 = vmatprep.subr.bf16.mxu1 %v1155_v52  ;;  %v288_v40 = vld [vmem:[#allocation5 + $0x748] sm:$0xff]  ;;  %v290_v42 = vld [vmem:[#allocation5 + $0x758] sm:$0xff]  ;;  %v287_v47 = vld [vmem:[#allocation5 + $0x740] sm:$0xff] }
  0x5e   :  { %v1099_v45 = vpack.c.bf16 %v288_v40, %v280_v39  ;;  %v281_v48 = vld [vmem:[#allocation5 + $0x710] sm:$0xff]  ;;  %v1175_v49 = vpack.c.bf16 %v290_v42, %v282_v41  ;;  %v296_v51 = vld [vmem:[#allocation5 + $0x788] sm:$0xff]  ;;  %v298_v53 = vld [vmem:[#allocation5 + $0x798] sm:$0xff]  ;;  %v1101_v55 = vpack.c.bf16 %v287_v47, %v279_v46 }
  0x5f   :  { %1082 = vmatpush1.bf16.msra.mxu0 %v1081_v58  ;;  %v289_v50 = vld [vmem:[#allocation5 + $0x750] sm:$0xff]  ;;  %v304_v52 = vld [vmem:[#allocation5 + $0x7c8] sm:$0xff]  ;;  %v306_v54 = vld [vmem:[#allocation5 + $0x7d8] sm:$0xff] }
  0x60   :  { %1158 = vmatpush1.bf16.msra.mxu1 %v1157_v59  ;;  %1084 = vmatprep.subr.bf16.mxu0 %v1083_v60  ;;  %v1177_v56 = vpack.c.bf16 %v289_v50, %v281_v48  ;;  %v1103_v57 = vpack.c.bf16 %v304_v52, %v296_v51  ;;  %v295_v58 = vld [vmem:[#allocation5 + $0x780] sm:$0xff]  ;;  %v297_v60 = vld [vmem:[#allocation5 + $0x790] sm:$0xff]  ;;  %v1179_v61 = vpack.c.bf16 %v306_v54, %v298_v53  ;;  %v312_v63 = vld [vmem:[#allocation5 + $0x808] sm:$0xff] }
  0x61   :  { %1160 = vmatprep.subr.bf16.mxu1 %v1159_v0  ;;  %v303_v59 = vld [vmem:[#allocation5 + $0x7c0] sm:$0xff]  ;;  %v305_v62 = vld [vmem:[#allocation5 + $0x7d0] sm:$0xff]  ;;  %v320_v0 = vld [vmem:[#allocation5 + $0x848] sm:$0xff] }
  0x62   :  { %v314_v1 = vld [vmem:[#allocation5 + $0x818] sm:$0xff]  ;;  %v1105_v3 = vpack.c.bf16 %v303_v59, %v295_v58  ;;  %v1181_v4 = vpack.c.bf16 %v305_v62, %v297_v60  ;;  %v1107_v5 = vpack.c.bf16 %v320_v0, %v312_v63  ;;  %v319_v7 = vld [vmem:[#allocation5 + $0x840] sm:$0xff]  ;;  %v321_v10 = vld [vmem:[#allocation5 + $0x850] sm:$0xff] }
  0x63   :  { %1086 = vmatpush1.bf16.msra.mxu0 %v1085_v6  ;;  %v322_v2 = vld [vmem:[#allocation5 + $0x858] sm:$0xff]  ;;  %v311_v6 = vld [vmem:[#allocation5 + $0x800] sm:$0xff]  ;;  %v328_v11 = vld [vmem:[#allocation5 + $0x888] sm:$0xff] }
  0x64   :  { %1162 = vmatpush1.bf16.msra.mxu1 %v1161_v8  ;;  %1088 = vmatprep.subr.bf16.mxu0 %v1087_v9  ;;  %v313_v8 = vld [vmem:[#allocation5 + $0x810] sm:$0xff]  ;;  %v1183_v9 = vpack.c.bf16 %v322_v2, %v314_v1  ;;  %v336_v12 = vld [vmem:[#allocation5 + $0x8c8] sm:$0xff]  ;;  %v338_v14 = vld [vmem:[#allocation5 + $0x8d8] sm:$0xff]  ;;  %v1109_v17 = vpack.c.bf16 %v319_v7, %v311_v6 }
  0x65   :  { %1164 = vmatprep.subr.bf16.mxu1 %v1163_v13  ;;  %v330_v13 = vld [vmem:[#allocation5 + $0x898] sm:$0xff]  ;;  %v1531_v15 = vld [vmem:[#allocation2] sm:$0xff]  ;;  %v1185_v18 = vpack.c.bf16 %v321_v10, %v313_v8  ;;  %v329_v22 = vld [vmem:[#allocation5 + $0x890] sm:$0xff] }
  0x66   :  { %v1187_v23 = vpack.c.bf16 %v338_v14, %v330_v13  ;;  %v337_v24 = vld [vmem:[#allocation5 + $0x8d0] sm:$0xff]  ;;  %v352_v26 = vld [vmem:[#allocation5 + $0x948] sm:$0xff]  ;;  %v346_v27 = vld [vmem:[#allocation5 + $0x918] sm:$0xff] }
  0x67   :  { %1090 = vmatpush1.bf16.msra.mxu0 %v1089_v19  ;;  %v1111_v19 = vpack.c.bf16 %v336_v12, %v328_v11  ;;  %v354_v28 = vld [vmem:[#allocation5 + $0x958] sm:$0xff]  ;;  %v1189_v30 = vpack.c.bf16 %v337_v24, %v329_v22  ;;  %v345_v35 = vld [vmem:[#allocation5 + $0x910] sm:$0xff]  ;;  %v360_v40 = vld [vmem:[#allocation5 + $0x988] sm:$0xf] }
  0x68   :  { %1166 = vmatpush1.bf16.msra.mxu1 %v1165_v20  ;;  %1092 = vmatprep.subr.bf16.mxu0 %v1091_v21  ;;  %v327_v20 = vld [vmem:[#allocation5 + $0x880] sm:$0xff]  ;;  %v1191_v34 = vpack.c.bf16 %v354_v28, %v346_v27  ;;  %v353_v36 = vld [vmem:[#allocation5 + $0x950] sm:$0xff]  ;;  %v362_v41 = vld [vmem:[#allocation5 + $0x998] sm:$0xf] }
  0x69   :  { %1168 = vmatprep.subr.bf16.mxu1 %v1167_v25  ;;  %v335_v21 = vld [vmem:[#allocation5 + $0x8c0] sm:$0xff]  ;;  %v344_v25 = vld [vmem:[#allocation5 + $0x908] sm:$0xff]  ;;  %v1193_v39 = vpack.c.bf16 %v353_v36, %v345_v35  ;;  %v70_v46 = vld [vmem:[#allocation5 + $0x78] sm:$0xff] }
  0x6a   :  { %v1113_v29 = vpack.c.bf16 %v335_v21, %v327_v20  ;;  %v60_v42 = vld [vmem:[#allocation5 + $0x28] sm:$0xff]  ;;  %v361_v47 = vld [vmem:[#allocation5 + $0x990] sm:$0xf]  ;;  %v59_v48 = vld [vmem:[#allocation5 + $0x20] sm:$0xff] }
  0x6b   :  { %1094 = vmatpush1.bf16.msra.mxu0 %v1093_v31  ;;  %v1115_v31 = vpack.c.bf16 %v352_v26, %v344_v25  ;;  %v61_v50 = vld [vmem:[#allocation5 + $0x30] sm:$0xff]  ;;  %v76_v52 = vld [vmem:[#allocation5 + $0xa8] sm:$0xff]  ;;  %v1539_v54 = vld [vmem:[#allocation2 + $0x10] sm:$0xff] }
  0x6c   :  { %1170 = vmatpush1.bf16.msra.mxu1 %v1169_v32  ;;  %1096 = vmatprep.subr.bf16.mxu0 %v1095_v33  ;;  %v343_v32 = vld [vmem:[#allocation5 + $0x900] sm:$0xff]  ;;  %v69_v51 = vld [vmem:[#allocation5 + $0x70] sm:$0xff]  ;;  %v84_v53 = vld [vmem:[#allocation5 + $0xe8] sm:$0xff] }
  0x6d   :  { %1172 = vmatprep.subr.bf16.mxu1 %v1171_v37  ;;  %v351_v33 = vld [vmem:[#allocation5 + $0x940] sm:$0xff]  ;;  %v1469_v37 = vmov 0.0   ;;  %v1273_v60 = vpack.c.bf16 %v69_v51, %v61_v50  ;;  %v77_v0 = vld [vmem:[#allocation5 + $0xb0] sm:$0xff]  ;;  %v102_v6 = vld [vmem:[#allocation5 + $0x178] sm:$0xff] }
  0x6e   :  { %v1117_v38 = vpack.c.bf16 %v351_v33, %v343_v32  ;;  %v75_v62 = vld [vmem:[#allocation5 + $0xa0] sm:$0xff]  ;;  %v85_v2 = vld [vmem:[#allocation5 + $0xf0] sm:$0xff]  ;;  %v118_v20 = vld [vmem:[#allocation5 + $0x1f8] sm:$0xff] }
  0x6f   :  { %1098 = vmatpush1.bf16.msra.mxu0 %v1097_v43  ;;  %v359_v43 = vld [vmem:[#allocation5 + $0x980] sm:$0xf]  ;;  %v1277_v8 = vpack.c.bf16 %v85_v2, %v77_v0  ;;  %v93_v12 = vld [vmem:[#allocation5 + $0x130] sm:$0xff]  ;;  %v134_v32 = vld [vmem:[#allocation5 + $0x278] sm:$0xff] }
  0x70   :  { %1174 = vmatpush1.bf16.msra.mxu1 %v1173_v44  ;;  %1100 = vmatprep.subr.bf16.mxu0 %v1099_v45  ;;  %v68_v44 = vld [vmem:[#allocation5 + $0x68] sm:$0xff]  ;;  %v62_v45 = vld [vmem:[#allocation5 + $0x38] sm:$0xff]  ;;  %v83_v63 = vld [vmem:[#allocation5 + $0xe0] sm:$0xff] }
  0x71   :  { %1176 = vmatprep.subr.bf16.mxu1 %v1175_v49  ;;  %v67_v49 = vld [vmem:[#allocation5 + $0x60] sm:$0xff]  ;;  %v1271_v58 = vpack.c.bf16 %v70_v46, %v62_v45  ;;  %v1201_v7 = vpack.c.bf16 %v83_v63, %v75_v62  ;;  %v101_v14 = vld [vmem:[#allocation5 + $0x170] sm:$0xff]  ;;  %v172_v2 = vld [vmem:[#allocation5 + $0x3a8] sm:$0xff] }
  0x72   :  { %v1197_v59 = vpack.c.bf16 %v67_v49, %v59_v48  ;;  %v91_v10 = vld [vmem:[#allocation5 + $0x120] sm:$0xff]  ;;  %v1281_v22 = vpack.c.bf16 %v101_v14, %v93_v12  ;;  %v109_v26 = vld [vmem:[#allocation5 + $0x1b0] sm:$0xff]  ;;  %v188_v14 = vld [vmem:[#allocation5 + $0x428] sm:$0xff] }
  0x73   :  { %1102 = vmatpush1.bf16.msra.mxu0 %v1101_v55  ;;  %v1195_v55 = vpack.c.bf16 %v68_v44, %v60_v42  ;;  %v99_v11 = vld [vmem:[#allocation5 + $0x160] sm:$0xff]  ;;  %v117_v28 = vld [vmem:[#allocation5 + $0x1f0] sm:$0xff]  ;;  %v148_v42 = vld [vmem:[#allocation5 + $0x2e8] sm:$0xff] }
  0x74   :  { %1178 = vmatpush1.bf16.msra.mxu1 %v1177_v56  ;;  %1104 = vmatprep.subr.bf16.mxu0 %v1103_v57  ;;  %v78_v56 = vld [vmem:[#allocation5 + $0xb8] sm:$0xff]  ;;  %v1205_v21 = vpack.c.bf16 %v99_v11, %v91_v10  ;;  %v107_v24 = vld [vmem:[#allocation5 + $0x1a0] sm:$0xff]  ;;  %v141_v50 = vld [vmem:[#allocation5 + $0x2b0] sm:$0xff] }
  0x75   :  { %1180 = vmatprep.subr.bf16.mxu1 %v1179_v61  ;;  %v86_v57 = vld [vmem:[#allocation5 + $0xf8] sm:$0xff]  ;;  %v1199_v61 = vpack.c.bf16 %v84_v53, %v76_v52  ;;  %v115_v25 = vld [vmem:[#allocation5 + $0x1e0] sm:$0xff]  ;;  %v149_v52 = vld [vmem:[#allocation5 + $0x2f0] sm:$0xff] }
  0x76   :  { %v1275_v1 = vpack.c.bf16 %v86_v57, %v78_v56  ;;  %v1209_v33 = vpack.c.bf16 %v115_v25, %v107_v24  ;;  %v123_v35 = vld [vmem:[#allocation5 + $0x220] sm:$0xff]  ;;  %v150_v44 = vld [vmem:[#allocation5 + $0x2f8] sm:$0xff]  ;;  %v156_v53 = vld [vmem:[#allocation5 + $0x328] sm:$0xff] }
  0x77   :  { %1106 = vmatpush1.bf16.msra.mxu0 %v1105_v3  ;;  %v92_v3 = vld [vmem:[#allocation5 + $0x128] sm:$0xff]  ;;  %v131_v36 = vld [vmem:[#allocation5 + $0x260] sm:$0xff]  ;;  %v158_v56 = vld [vmem:[#allocation5 + $0x338] sm:$0xff] }
  0x78   :  { %1182 = vmatpush1.bf16.msra.mxu1 %v1181_v4  ;;  %1108 = vmatprep.subr.bf16.mxu0 %v1107_v5  ;;  %v100_v4 = vld [vmem:[#allocation5 + $0x168] sm:$0xff]  ;;  %v94_v5 = vld [vmem:[#allocation5 + $0x138] sm:$0xff]  ;;  %v1213_v45 = vpack.c.bf16 %v131_v36, %v123_v35  ;;  %v139_v48 = vld [vmem:[#allocation5 + $0x2a0] sm:$0xff] }
  0x79   :  { %1184 = vmatprep.subr.bf16.mxu1 %v1183_v9  ;;  %v1203_v9 = vpack.c.bf16 %v100_v4, %v92_v3  ;;  %v1279_v13 = vpack.c.bf16 %v102_v6, %v94_v5  ;;  %v147_v49 = vld [vmem:[#allocation5 + $0x2e0] sm:$0xff]  ;;  %v166_v57 = vld [vmem:[#allocation5 + $0x378] sm:$0xff]  ;;  %v157_v63 = vld [vmem:[#allocation5 + $0x330] sm:$0xff] }
  0x7a   :  { %503 = vmatmul.mubr.f32.vlgmr.msra.gmra.mrb[0].mxu0 %v1531_v15  ;;  %v163_v62 = vld [vmem:[#allocation5 + $0x360] sm:$0xff]  ;;  %v1295_v0 = vpack.c.bf16 %v166_v57, %v158_v56  ;;  %v180_v3 = vld [vmem:[#allocation5 + $0x3e8] sm:$0xff]  ;;  %v174_v4 = vld [vmem:[#allocation5 + $0x3b8] sm:$0xff] }
  0x7b   :  { %1110 = vmatpush1.bf16.msra.mxu0 %v1109_v17  ;;  %645 = vmatmul.mubr.f32.vlgmr.msra.gmra.mrb[0].mxu1 %v1531_v15  ;;  %v108_v17 = vld [vmem:[#allocation5 + $0x1a8] sm:$0xff]  ;;  %v182_v5 = vld [vmem:[#allocation5 + $0x3f8] sm:$0xff]  ;;  %v179_v10 = vld [vmem:[#allocation5 + $0x3e0] sm:$0xff] }
  0x7c   :  { %1186 = vmatpush1.bf16.msra.mxu1 %v1185_v18  ;;  %1112 = vmatprep.subr.bf16.mxu0 %v1111_v19  ;;  %v116_v18 = vld [vmem:[#allocation5 + $0x1e8] sm:$0xff]  ;;  %v110_v19 = vld [vmem:[#allocation5 + $0x1b8] sm:$0xff]  ;;  %v173_v11 = vld [vmem:[#allocation5 + $0x3b0] sm:$0xff]  ;;  %v1299_v12 = vpack.c.bf16 %v182_v5, %v174_v4 }
  0x7d   :  { %1188 = vmatprep.subr.bf16.mxu1 %v1187_v23  ;;  %573 = vmatprep.mubr.f32.mxu0 %v1469_v37  ;;  %v1207_v23 = vpack.c.bf16 %v116_v18, %v108_v17  ;;  %v1283_v27 = vpack.c.bf16 %v118_v20, %v110_v19  ;;  %v196_v17 = vld [vmem:[#allocation5 + $0x468] sm:$0xff]  ;;  %v190_v18 = vld [vmem:[#allocation5 + $0x438] sm:$0xff]  ;;  %v195_v24 = vld [vmem:[#allocation5 + $0x460] sm:$0xff] }
  0x7e   :  { %715 = vmatprep.mubr.f32.mxu1 %v1469_v37  ;;  %v198_v19 = vld [vmem:[#allocation5 + $0x478] sm:$0xff]  ;;  %v189_v25 = vld [vmem:[#allocation5 + $0x430] sm:$0xff]  ;;  %v211_v35 = vld [vmem:[#allocation5 + $0x4e0] sm:$0xff] }
  0x7f   :  { %1114 = vmatpush1.bf16.msra.mxu0 %v1113_v29  ;;  %v124_v29 = vld [vmem:[#allocation5 + $0x228] sm:$0xff]  ;;  %v205_v36 = vld [vmem:[#allocation5 + $0x4b0] sm:$0xff]  ;;  %v246_v56 = vld [vmem:[#allocation5 + $0x5f8] sm:$0xff] }
  0x80   :  { %1190 = vmatpush1.bf16.msra.mxu1 %v1189_v30  ;;  %1116 = vmatprep.subr.bf16.mxu0 %v1115_v31  ;;  %v132_v30 = vld [vmem:[#allocation5 + $0x268] sm:$0xff]  ;;  %v126_v31 = vld [vmem:[#allocation5 + $0x238] sm:$0xff] }
  0x81   :  { %1192 = vmatprep.subr.bf16.mxu1 %v1191_v34  ;;  %v1211_v34 = vpack.c.bf16 %v132_v30, %v124_v29  ;;  %v212_v29 = vld [vmem:[#allocation5 + $0x4e8] sm:$0xff]  ;;  %v206_v30 = vld [vmem:[#allocation5 + $0x4b8] sm:$0xff] }
  0x82   :  { %v262_v4 = vld [vmem:[#allocation5 + $0x678] sm:$0xff] }
  0x83   :  { %1118 = vmatpush1.bf16.msra.mxu0 %v1117_v38  ;;  %v125_v38 = vld [vmem:[#allocation5 + $0x230] sm:$0xff] }
  0x84   :  { %1194 = vmatpush1.bf16.msra.mxu1 %v1193_v39  ;;  %1031 = vmatprep.subr.msk.mxu0 %vm413_vm0, %v360_v40  ;;  %v1287_v39 = vpack.c.bf16 %v134_v32, %v126_v31  ;;  %v133_v40 = vld [vmem:[#allocation5 + $0x270] sm:$0xff]  ;;  %v214_v31 = vld [vmem:[#allocation5 + $0x4f8] sm:$0xff] }
  0x85   :  { %1034 = vmatprep.subr.msk.mxu1 %vm413_vm0, %v362_v41  ;;  %v140_v41 = vld [vmem:[#allocation5 + $0x2a8] sm:$0xff]  ;;  %v1289_v46 = vpack.c.bf16 %v133_v40, %v125_v38  ;;  %v1307_v38 = vpack.c.bf16 %v214_v31, %v206_v30  ;;  %v294_v30 = vld [vmem:[#allocation5 + $0x778] sm:$0xff] }
  0x86   :  { %v220_v40 = vld [vmem:[#allocation5 + $0x528] sm:$0xff] }
  0x87   :  { %1032 = vmatpush1.msk.msra.mxu0 %vm413_vm0, %v359_v43  ;;  %v142_v43 = vld [vmem:[#allocation5 + $0x2b8] sm:$0xff] }
  0x88   :  { %1035 = vmatpush1.msk.msra.mxu1 %vm413_vm0, %v361_v47  ;;  %1033 = vmatmul.mubr.msk.f32.vlgmr.msra.gmra.mrb[0].mxu0 %vm409_vm1, %v1539_v54  ;;  %v1215_v47 = vpack.c.bf16 %v148_v42, %v140_v41  ;;  %v1291_v51 = vpack.c.bf16 %v150_v44, %v142_v43  ;;  %v228_v41 = vld [vmem:[#allocation5 + $0x568] sm:$0xff]  ;;  %v222_v42 = vld [vmem:[#allocation5 + $0x538] sm:$0xff] }
  0x89   :  { %1036 = vmatmul.mubr.msk.f32.vlgmr.msra.gmra.mrb[0].mxu1 %vm409_vm1, %v1539_v54  ;;  %1196 = vmatprep.subr.bf16.mxu0 %v1195_v55  ;;  %v164_v55 = vld [vmem:[#allocation5 + $0x368] sm:$0xff]  ;;  %v230_v43 = vld [vmem:[#allocation5 + $0x578] sm:$0xff] }
  0x8a   :  { %1272 = vmatprep.subr.bf16.mxu1 %v1271_v58  ;;  %1198 = vmatpush1.bf16.msra.mxu0 %v1197_v59  ;;  %v1217_v58 = vpack.c.bf16 %v147_v49, %v139_v48  ;;  %v1293_v59 = vpack.c.bf16 %v149_v52, %v141_v50  ;;  %v227_v48 = vld [vmem:[#allocation5 + $0x560] sm:$0xff]  ;;  %v221_v49 = vld [vmem:[#allocation5 + $0x530] sm:$0xff]  ;;  %v1311_v50 = vpack.c.bf16 %v230_v43, %v222_v42  ;;  %v236_v52 = vld [vmem:[#allocation5 + $0x5a8] sm:$0xff] }
  0x8b   :  { %1274 = vmatpush1.bf16.msra.mxu1 %v1273_v60  ;;  %1200 = vmatprep.subr.bf16.mxu0 %v1199_v61  ;;  %v1219_v60 = vpack.c.bf16 %v164_v55, %v156_v53  ;;  %v155_v61 = vld [vmem:[#allocation5 + $0x320] sm:$0xff]  ;;  %v244_v53 = vld [vmem:[#allocation5 + $0x5e8] sm:$0xff]  ;;  %v238_v55 = vld [vmem:[#allocation5 + $0x5b8] sm:$0xff] }
  0x8c   :  { %1276 = vmatprep.subr.bf16.mxu1 %v1275_v1  ;;  %786 = vmatprep.mubr.f32.mxu0 %v1527_v16  ;;  %v165_v1 = vld [vmem:[#allocation5 + $0x370] sm:$0xff]  ;;  %v1221_v6 = vpack.c.bf16 %v163_v62, %v155_v61  ;;  %v243_v61 = vld [vmem:[#allocation5 + $0x5e0] sm:$0xff]  ;;  %v310_v42 = vld [vmem:[#allocation5 + $0x7f8] sm:$0xff] }
  0x8d   :  { %928 = vmatprep.mubr.f32.mxu1 %v1527_v16  ;;  %v1285_v16 = vpack.c.bf16 %v117_v28, %v109_v26  ;;  %v1303_v26 = vpack.c.bf16 %v198_v19, %v190_v18  ;;  %v204_v28 = vld [vmem:[#allocation5 + $0x4a8] sm:$0xff]  ;;  %v237_v62 = vld [vmem:[#allocation5 + $0x5b0] sm:$0xff]  ;;  %v278_v18 = vld [vmem:[#allocation5 + $0x6f8] sm:$0xff] }
  0x8e   :  { %1202 = vmatpush1.bf16.msra.mxu0 %v1201_v7  ;;  %v1297_v7 = vpack.c.bf16 %v165_v1, %v157_v63  ;;  %v1315_v63 = vpack.c.bf16 %v246_v56, %v238_v55  ;;  %v252_v1 = vld [vmem:[#allocation5 + $0x628] sm:$0xff]  ;;  %v326_v55 = vld [vmem:[#allocation5 + $0x878] sm:$0xff] }
  0x8f   :  { %1278 = vmatpush1.bf16.msra.mxu1 %v1277_v8  ;;  %1204 = vmatprep.subr.bf16.mxu0 %v1203_v9  ;;  %v1223_v8 = vpack.c.bf16 %v180_v3, %v172_v2  ;;  %v171_v9 = vld [vmem:[#allocation5 + $0x3a0] sm:$0xff]  ;;  %v260_v2 = vld [vmem:[#allocation5 + $0x668] sm:$0xff]  ;;  %v254_v3 = vld [vmem:[#allocation5 + $0x638] sm:$0xff] }
  0x90   :  { %1280 = vmatprep.subr.bf16.mxu1 %v1279_v13  ;;  %v181_v13 = vld [vmem:[#allocation5 + $0x3f0] sm:$0xff]  ;;  %v1225_v20 = vpack.c.bf16 %v179_v10, %v171_v9  ;;  %v259_v9 = vld [vmem:[#allocation5 + $0x660] sm:$0xff] }
  0x91   :  { %v253_v10 = vld [vmem:[#allocation5 + $0x630] sm:$0xff] }
  0x92   :  { %1206 = vmatpush1.bf16.msra.mxu0 %v1205_v21  ;;  %v1301_v21 = vpack.c.bf16 %v181_v13, %v173_v11  ;;  %v1319_v11 = vpack.c.bf16 %v262_v4, %v254_v3  ;;  %v268_v13 = vld [vmem:[#allocation5 + $0x6a8] sm:$0xff]  ;;  %v342_v3 = vld [vmem:[#allocation5 + $0x8f8] sm:$0xff] }
  0x93   :  { %1282 = vmatpush1.bf16.msra.mxu1 %v1281_v22  ;;  %1208 = vmatprep.subr.bf16.mxu0 %v1207_v23  ;;  %v1227_v22 = vpack.c.bf16 %v196_v17, %v188_v14  ;;  %v187_v23 = vld [vmem:[#allocation5 + $0x420] sm:$0xff]  ;;  %v276_v14 = vld [vmem:[#allocation5 + $0x6e8] sm:$0xff]  ;;  %v270_v17 = vld [vmem:[#allocation5 + $0x6b8] sm:$0xff] }
  0x94   :  { %1284 = vmatprep.subr.bf16.mxu1 %v1283_v27  ;;  %v197_v27 = vld [vmem:[#allocation5 + $0x470] sm:$0xff]  ;;  %v1229_v32 = vpack.c.bf16 %v195_v24, %v187_v23  ;;  %v275_v23 = vld [vmem:[#allocation5 + $0x6e0] sm:$0xff] }
  0x95   :  { %v269_v24 = vld [vmem:[#allocation5 + $0x6b0] sm:$0xff] }
  0x96   :  { %1210 = vmatpush1.bf16.msra.mxu0 %v1209_v33  ;;  %v1305_v33 = vpack.c.bf16 %v197_v27, %v189_v25  ;;  %v1323_v25 = vpack.c.bf16 %v278_v18, %v270_v17  ;;  %v284_v27 = vld [vmem:[#allocation5 + $0x728] sm:$0xff]  ;;  %v358_v17 = vld [vmem:[#allocation5 + $0x978] sm:$0xff] }
  0x97   :  { %1286 = vmatpush1.bf16.msra.mxu1 %v1285_v16  ;;  %1212 = vmatprep.subr.bf16.mxu0 %v1211_v34  ;;  %v1231_v16 = vpack.c.bf16 %v212_v29, %v204_v28  ;;  %v203_v34 = vld [vmem:[#allocation5 + $0x4a0] sm:$0xff]  ;;  %v292_v28 = vld [vmem:[#allocation5 + $0x768] sm:$0xff]  ;;  %v286_v29 = vld [vmem:[#allocation5 + $0x738] sm:$0xff] }
  0x98   :  { %1288 = vmatprep.subr.bf16.mxu1 %v1287_v39  ;;  %v213_v39 = vld [vmem:[#allocation5 + $0x4f0] sm:$0xff]  ;;  %v1233_v44 = vpack.c.bf16 %v211_v35, %v203_v34  ;;  %v291_v34 = vld [vmem:[#allocation5 + $0x760] sm:$0xff] }
  0x99   :  { %v285_v35 = vld [vmem:[#allocation5 + $0x730] sm:$0xff] }
  0x9a   :  { %1214 = vmatpush1.bf16.msra.mxu0 %v1213_v45  ;;  %v1309_v45 = vpack.c.bf16 %v213_v39, %v205_v36  ;;  %v1327_v36 = vpack.c.bf16 %v294_v30, %v286_v29  ;;  %v300_v39 = vld [vmem:[#allocation5 + $0x7a8] sm:$0xff]  ;;  %v363_v29 = vld [vmem:[#allocation5 + $0x9a0] sm:$0xf]  ;;  %v365_v30 = vld [vmem:[#allocation5 + $0x9b0] sm:$0xf] }
  0x9b   :  { %1290 = vmatpush1.bf16.msra.mxu1 %v1289_v46  ;;  %1216 = vmatprep.subr.bf16.mxu0 %v1215_v47  ;;  %v1235_v46 = vpack.c.bf16 %v228_v41, %v220_v40  ;;  %v219_v47 = vld [vmem:[#allocation5 + $0x520] sm:$0xff]  ;;  %v308_v40 = vld [vmem:[#allocation5 + $0x7e8] sm:$0xff]  ;;  %v302_v41 = vld [vmem:[#allocation5 + $0x7b8] sm:$0xff] }
  0x9c   :  { %1292 = vmatprep.subr.bf16.mxu1 %v1291_v51  ;;  %v229_v51 = vld [vmem:[#allocation5 + $0x570] sm:$0xff]  ;;  %v1237_v57 = vpack.c.bf16 %v227_v48, %v219_v47  ;;  %v307_v47 = vld [vmem:[#allocation5 + $0x7e0] sm:$0xff] }
  0x9d   :  { %v301_v48 = vld [vmem:[#allocation5 + $0x7b0] sm:$0xff] }
  0x9e   :  { %1218 = vmatpush1.bf16.msra.mxu0 %v1217_v58  ;;  %v1313_v58 = vpack.c.bf16 %v229_v51, %v221_v49  ;;  %v1331_v49 = vpack.c.bf16 %v310_v42, %v302_v41  ;;  %v316_v51 = vld [vmem:[#allocation5 + $0x828] sm:$0xff] }
  0x9f   :  { %1294 = vmatpush1.bf16.msra.mxu1 %v1293_v59  ;;  %1220 = vmatprep.subr.bf16.mxu0 %v1219_v60  ;;  %v1239_v59 = vpack.c.bf16 %v244_v53, %v236_v52  ;;  %v235_v60 = vld [vmem:[#allocation5 + $0x5a0] sm:$0xff]  ;;  %v324_v52 = vld [vmem:[#allocation5 + $0x868] sm:$0xff]  ;;  %v318_v53 = vld [vmem:[#allocation5 + $0x838] sm:$0xff] }
  0xa0   :  { %1296 = vmatprep.subr.bf16.mxu1 %v1295_v0  ;;  %v245_v0 = vld [vmem:[#allocation5 + $0x5f0] sm:$0xff]  ;;  %v1241_v5 = vpack.c.bf16 %v243_v61, %v235_v60  ;;  %v323_v60 = vld [vmem:[#allocation5 + $0x860] sm:$0xff] }
  0xa1   :  { %v317_v61 = vld [vmem:[#allocation5 + $0x830] sm:$0xff] }
  0xa2   :  { %1222 = vmatpush1.bf16.msra.mxu0 %v1221_v6  ;;  %v1317_v6 = vpack.c.bf16 %v245_v0, %v237_v62  ;;  %v1335_v62 = vpack.c.bf16 %v326_v55, %v318_v53  ;;  %v332_v0 = vld [vmem:[#allocation5 + $0x8a8] sm:$0xff] }
  0xa3   :  { %1298 = vmatpush1.bf16.msra.mxu1 %v1297_v7  ;;  %1224 = vmatprep.subr.bf16.mxu0 %v1223_v8  ;;  %v1243_v7 = vpack.c.bf16 %v260_v2, %v252_v1  ;;  %v251_v8 = vld [vmem:[#allocation5 + $0x620] sm:$0xff]  ;;  %v340_v1 = vld [vmem:[#allocation5 + $0x8e8] sm:$0xff]  ;;  %v334_v2 = vld [vmem:[#allocation5 + $0x8b8] sm:$0xff] }
  0xa4   :  { %1300 = vmatprep.subr.bf16.mxu1 %v1299_v12  ;;  %v261_v12 = vld [vmem:[#allocation5 + $0x670] sm:$0xff]  ;;  %v1245_v19 = vpack.c.bf16 %v259_v9, %v251_v8  ;;  %v339_v8 = vld [vmem:[#allocation5 + $0x8e0] sm:$0xff] }
  0xa5   :  { %v333_v9 = vld [vmem:[#allocation5 + $0x8b0] sm:$0xff] }
  0xa6   :  { %1226 = vmatpush1.bf16.msra.mxu0 %v1225_v20  ;;  %v1321_v20 = vpack.c.bf16 %v261_v12, %v253_v10  ;;  %v1339_v10 = vpack.c.bf16 %v342_v3, %v334_v2  ;;  %v348_v12 = vld [vmem:[#allocation5 + $0x928] sm:$0xff] }
  0xa7   :  { %1302 = vmatpush1.bf16.msra.mxu1 %v1301_v21  ;;  %1228 = vmatprep.subr.bf16.mxu0 %v1227_v22  ;;  %v1247_v21 = vpack.c.bf16 %v276_v14, %v268_v13  ;;  %v267_v22 = vld [vmem:[#allocation5 + $0x6a0] sm:$0xff]  ;;  %v356_v13 = vld [vmem:[#allocation5 + $0x968] sm:$0xff]  ;;  %v350_v14 = vld [vmem:[#allocation5 + $0x938] sm:$0xff] }
  0xa8   :  { %1304 = vmatprep.subr.bf16.mxu1 %v1303_v26  ;;  %v277_v26 = vld [vmem:[#allocation5 + $0x6f0] sm:$0xff]  ;;  %v1249_v31 = vpack.c.bf16 %v275_v23, %v267_v22  ;;  %v355_v22 = vld [vmem:[#allocation5 + $0x960] sm:$0xff]  ;;  %v1343_v23 = vpack.c.bf16 %v358_v17, %v350_v14 }
  0xaa   :  { %1230 = vmatpush1.bf16.msra.mxu0 %v1229_v32  ;;  %v1325_v32 = vpack.c.bf16 %v277_v26, %v269_v24  ;;  %v349_v24 = vld [vmem:[#allocation5 + $0x930] sm:$0xff] }
  0xab   :  { %1306 = vmatpush1.bf16.msra.mxu1 %v1305_v33  ;;  %1232 = vmatprep.subr.bf16.mxu0 %v1231_v16  ;;  %v1251_v33 = vpack.c.bf16 %v292_v28, %v284_v27  ;;  %v283_v16 = vld [vmem:[#allocation5 + $0x720] sm:$0xff]  ;;  %v364_v27 = vld [vmem:[#allocation5 + $0x9a8] sm:$0xf]  ;;  %v366_v28 = vld [vmem:[#allocation5 + $0x9b8] sm:$0xf] }
  0xac   :  { %1308 = vmatprep.subr.bf16.mxu1 %v1307_v38  ;;  %v293_v38 = vld [vmem:[#allocation5 + $0x770] sm:$0xff]  ;;  %v1253_v43 = vpack.c.bf16 %v291_v34, %v283_v16 }
  0xae   :  { %1234 = vmatpush1.bf16.msra.mxu0 %v1233_v44  ;;  %v1329_v44 = vpack.c.bf16 %v293_v38, %v285_v35 }
  0xaf   :  { %1310 = vmatpush1.bf16.msra.mxu1 %v1309_v45  ;;  %1236 = vmatprep.subr.bf16.mxu0 %v1235_v46  ;;  %v1255_v45 = vpack.c.bf16 %v308_v40, %v300_v39  ;;  %v299_v46 = vld [vmem:[#allocation5 + $0x7a0] sm:$0xff] }
  0xb0   :  { %1312 = vmatprep.subr.bf16.mxu1 %v1311_v50  ;;  %v309_v50 = vld [vmem:[#allocation5 + $0x7f0] sm:$0xff]  ;;  %v1257_v56 = vpack.c.bf16 %v307_v47, %v299_v46 }
  0xb2   :  { %1238 = vmatpush1.bf16.msra.mxu0 %v1237_v57  ;;  %v1333_v57 = vpack.c.bf16 %v309_v50, %v301_v48 }
  0xb3   :  { %1314 = vmatpush1.bf16.msra.mxu1 %v1313_v58  ;;  %1240 = vmatprep.subr.bf16.mxu0 %v1239_v59  ;;  %v1259_v58 = vpack.c.bf16 %v324_v52, %v316_v51  ;;  %v315_v59 = vld [vmem:[#allocation5 + $0x820] sm:$0xff] }
  0xb4   :  { %1316 = vmatprep.subr.bf16.mxu1 %v1315_v63  ;;  %v325_v63 = vld [vmem:[#allocation5 + $0x870] sm:$0xff]  ;;  %v1261_v4 = vpack.c.bf16 %v323_v60, %v315_v59 }
  0xb6   :  { %1242 = vmatpush1.bf16.msra.mxu0 %v1241_v5  ;;  %v1337_v5 = vpack.c.bf16 %v325_v63, %v317_v61 }
  0xb7   :  { %1318 = vmatpush1.bf16.msra.mxu1 %v1317_v6  ;;  %1244 = vmatprep.subr.bf16.mxu0 %v1243_v7  ;;  %v1263_v6 = vpack.c.bf16 %v340_v1, %v332_v0  ;;  %v331_v7 = vld [vmem:[#allocation5 + $0x8a0] sm:$0xff] }
  0xb8   :  { %1320 = vmatprep.subr.bf16.mxu1 %v1319_v11  ;;  %v341_v11 = vld [vmem:[#allocation5 + $0x8f0] sm:$0xff]  ;;  %v1265_v18 = vpack.c.bf16 %v339_v8, %v331_v7 }
  0xba   :  { %1246 = vmatpush1.bf16.msra.mxu0 %v1245_v19  ;;  %v1341_v19 = vpack.c.bf16 %v341_v11, %v333_v9 }
  0xbb   :  { %1322 = vmatpush1.bf16.msra.mxu1 %v1321_v20  ;;  %1248 = vmatprep.subr.bf16.mxu0 %v1247_v21  ;;  %v1267_v20 = vpack.c.bf16 %v356_v13, %v348_v12  ;;  %v347_v21 = vld [vmem:[#allocation5 + $0x920] sm:$0xff] }
  0xbc   :  { %1324 = vmatprep.subr.bf16.mxu1 %v1323_v25  ;;  %v357_v25 = vld [vmem:[#allocation5 + $0x970] sm:$0xff]  ;;  %v1269_v26 = vpack.c.bf16 %v355_v22, %v347_v21 }
  0xbe   :  { %1250 = vmatpush1.bf16.msra.mxu0 %v1249_v31 }
  0xbf   :  { %1326 = vmatpush1.bf16.msra.mxu1 %v1325_v32  ;;  %1252 = vmatprep.subr.bf16.mxu0 %v1251_v33  ;;  %v367_v33 = vld [vmem:[#allocation7] sm:$0xff] }
  0xc0   :  { %1328 = vmatprep.subr.bf16.mxu1 %v1327_v36 }
  0xc2   :  { %1254 = vmatpush1.bf16.msra.mxu0 %v1253_v43 }
  0xc3   :  { %1330 = vmatpush1.bf16.msra.mxu1 %v1329_v44  ;;  %1256 = vmatprep.subr.bf16.mxu0 %v1255_v45 }
  0xc4   :  { %1332 = vmatprep.subr.bf16.mxu1 %v1331_v49 }
  0xc6   :  { %1258 = vmatpush1.bf16.msra.mxu0 %v1257_v56 }
  0xc7   :  { %1334 = vmatpush1.bf16.msra.mxu1 %v1333_v57  ;;  %1260 = vmatprep.subr.bf16.mxu0 %v1259_v58 }
  0xc8   :  { %1336 = vmatprep.subr.bf16.mxu1 %v1335_v62 }
  0xc9   :  { %787 = vmatmul.mubr.f32.vlgmr.msra.gmra.mrb[2].mxu0 %v1531_v15 }
  0xca   :  { %1262 = vmatpush1.bf16.msra.mxu0 %v1261_v4  ;;  %929 = vmatmul.mubr.f32.vlgmr.msra.gmra.mrb[2].mxu1 %v1531_v15  ;;  %v1345_v15 = vpack.c.bf16 %v357_v25, %v349_v24 }
  0xcb   :  { %1338 = vmatpush1.bf16.msra.mxu1 %v1337_v5  ;;  %1264 = vmatprep.subr.bf16.mxu0 %v1263_v6 }
  0xcc   :  { %1340 = vmatprep.subr.bf16.mxu1 %v1339_v10  ;;  %857 = vmatprep.mubr.f32.mxu0 %v1469_v37 }
  0xcd   :  { %999 = vmatprep.mubr.f32.mxu1 %v1469_v37  ;;  %v369_v37 = vlaneseq }
  0xce   :  { %1266 = vmatpush1.bf16.msra.mxu0 %v1265_v18 }
  0xcf   :  { %1342 = vmatpush1.bf16.msra.mxu1 %v1341_v19  ;;  %1268 = vmatprep.subr.bf16.mxu0 %v1267_v20  ;;  %v370_v31 = vshrl.u32 %v369_v37, 7 }
  0xd0   :  { %1344 = vmatprep.subr.bf16.mxu1 %v1343_v23 }
  0xd1   :  { %v371_v32 = vsub.s32 0, %v370_v31  ;;  %v379_v16 = vsub.s32 2, %v370_v31  ;;  %v375_v34 = vsub.s32 1, %v370_v31  ;;  %v383_v35 = vsub.s32 3, %v370_v31 }
  0xd2   :  { %1270 = vmatpush1.bf16.msra.mxu0 %v1269_v26  ;;  %v387_v48 = vsub.s32 4, %v370_v31  ;;  %v395_v49 = vsub.s32 6, %v370_v31  ;;  %v391_v50 = vsub.s32 5, %v370_v31  ;;  %v399_v51 = vsub.s32 7, %v370_v31 }
  0xd3   :  { %1346 = vmatpush1.bf16.msra.mxu1 %v1345_v15  ;;  %1037 = vmatprep.subr.msk.mxu0 %vm413_vm0, %v364_v27  ;;  %v372_v36 = vrot.slane %v367_v33, %v371_v32  ;;  %v380_v38 = vrot.slane %v367_v33, %v379_v16  ;;  %v376_v39 = vrot.slane %v367_v33, %v375_v34 }
  0xd4   :  { %1040 = vmatprep.subr.msk.mxu1 %vm413_vm0, %v366_v28  ;;  %v384_v40 = vrot.slane %v367_v33, %v383_v35  ;;  %v388_v52 = vrot.slane %v367_v33, %v387_v48  ;;  %v396_v53 = vrot.slane %v367_v33, %v395_v49  ;;  %v392_v55 = vrot.slane %v367_v33, %v391_v50 }
  0xd5   :  { %v400_v56 = vrot.slane %v367_v33, %v399_v51 }
  0xd6   :  { %1038 = vmatpush1.msk.msra.mxu0 %vm413_vm0, %v363_v29 }
  0xd7   :  { %1041 = vmatpush1.msk.msra.mxu1 %vm413_vm0, %v365_v30  ;;  %1039 = vmatmul.mubr.msk.f32.vlgmr.msra.gmra.mrb[2].mxu0 %vm409_vm1, %v1539_v54 }
  0xd8   :  { %1042 = vmatmul.mubr.msk.f32.vlgmr.msra.gmra.mrb[2].mxu1 %vm409_vm1, %v1539_v54 }
 0x15b   :  { %v575_v41 = vpop.f32.mrb[0].mxu0 }
 0x15c   :  { %v1347_v42 = vadd.f32 %v575_v41, %v372_v36  ;;  %v717_v43 = vpop.f32.mrb[0].mxu1  ;;  %v577_v44 = vpop.f32.mrb[1].mxu0 }
 0x15d   :  { %v1349_v45 = vadd.f32 %v717_v43, %v380_v38  ;;  %v1348_v46 = vadd.f32 %v577_v44, %v376_v39  ;;  %v719_v47 = vpop.f32.mrb[1].mxu1 }
 0x15e   :  { %1006 = vst [vmem:[#allocation8] sm:$0xff] %v1347_v42  ;;  %v1350_v54 = vadd.f32 %v719_v47, %v384_v40 }
 0x15f   :  { %1008 = vst [vmem:[#allocation8 + $0x10] sm:$0xff] %v1349_v45  ;;  %1007 = vst [vmem:[#allocation8 + $0x8] sm:$0xff] %v1348_v46 }
 0x160   :  { %1009 = vst [vmem:[#allocation8 + $0x18] sm:$0xff] %v1350_v54 }
 0x1aa   :  { %v859_v57 = vpop.f32.mrb[2].mxu0 }
 0x1ab   :  { %v1351_v58 = vadd.f32 %v859_v57, %v388_v52  ;;  %v1001_v59 = vpop.f32.mrb[2].mxu1  ;;  %v861_v60 = vpop.f32.mrb[3].mxu0 }
 0x1ac   :  { %v1353_v61 = vadd.f32 %v1001_v59, %v396_v53  ;;  %v1352_v62 = vadd.f32 %v861_v60, %v392_v55  ;;  %v1003_v63 = vpop.f32.mrb[3].mxu1 }
 0x1ad   :  { %1010 = vst [vmem:[#allocation8 + $0x20] sm:$0xff] %v1351_v58  ;;  %v1354_v0 = vadd.f32 %v1003_v63, %v400_v56 }
 0x1ae   :  { %1012 = vst [vmem:[#allocation8 + $0x30] sm:$0xff] %v1353_v61  ;;  %1011 = vst [vmem:[#allocation8 + $0x28] sm:$0xff] %v1352_v62 }
 0x1af   :  { %1014 = vst.msk [vmem:[#allocation8 + $0x38] sm:$0xff] %vm1013_vm2, %v1354_v0 }
 0x1b0   :  { %1447 = shalt.err (!%p1444_p0)
}
 0x1b1   :  { %s1448_s25 = scalar_lea.hbm %s1576_s3, 1024 }
 0x1b2   :  { %p1449_p1 = scmp.ne.s32.totalorder %s1576_s3, %s1448_s25  ;;  %p1452_p2 = scmp.lt.u32.totalorder %s1448_s25, %s1576_s3 }
 0x1b4   :  { %p1454_p3 = pnand %p1452_p2, %p1449_p1 }
 0x1b6   :  { %1457 = shalt.err (!%p1454_p3)
}
 0x1b7   :  { %1024 = dma.vmem_to_hbm [thread:$0]  %s1022_s21, 1024, %s1576_s3, [#allocation4]  }
 0x1b8   :  { %1462 = dma.done.wait [#allocation4], 1024  }
 0x1b9   :  { %1463 = vsyncadd [#allocation4], 4294966272 }
 0x1ba   :  { %1028 = vsyncpa [#allocation3], 1 }
 0x1bb   :  { %1029 = vsyncpa [#allocation6], 1 }
 0x1bc   :  { %1030 = vsyncpa [#allocation4], 1 }

</bundles_post_ra>
